<compile_context>
chip_gen: v7x
topology: tpu7x:2x2x1
jax: 0.10.0
libtpu: 0.0.40
codegen_flags: <defaults>
</compile_context>

<pallas_src>
import jax
import jax.numpy as jnp
from jax.experimental import pallas as pl
from jax.experimental.pallas import tpu as pltpu

HIDDEN = 512  # fixed by the module (nn.Linear(512, 512))


def _round_up(x, m):
    return ((x + m - 1) // m) * m


# ------------------ kernel 1: word-conditioning MLP (tiny) -------------------

def _word_mlp_kernel(cond_ref, w1_ref, b1_ref, w2g_ref, b2g_ref,
                     w2b_ref, b2b_ref, gm_ref, bm_ref):
    """Per-batch gamma/beta MLP with the word-mean folded before layer 2.

    grid = (B,)
      cond_ref : (L, 512)      this batch's word embeddings (batch dim Squeezed)
      w1_ref   : (512, 1024)   [w1_gamma | w1_beta]   (single MXU pass)
      b1_ref   : (1, 1024)
      w2*_ref  : (512, C) / (1, C)
      gm_ref   : (1, C)        mean_l gamma   (batch dim Squeezed)
      bm_ref   : (1, C)        mean_l beta
    """
    cond = cond_ref[...]                                             # (L, 512)
    h = jnp.dot(cond, w1_ref[...],
                preferred_element_type=jnp.float32) + b1_ref[...]
    h = jnp.maximum(h, 0.0)                                          # (L, 1024)
    # mean over the word axis commutes with the (linear) second layer.
    h_mean = jnp.sum(h, axis=0, keepdims=True) * (1.0 / cond.shape[0])
    gm_ref[...] = (jnp.dot(h_mean[:, :HIDDEN], w2g_ref[...],
                           preferred_element_type=jnp.float32) + b2g_ref[...])
    bm_ref[...] = (jnp.dot(h_mean[:, HIDDEN:], w2b_ref[...],
                           preferred_element_type=jnp.float32) + b2b_ref[...])


def _word_mlp(cond, params):
    """cond: (B, L, 512) f32 -> (gamma_mean, beta_mean), each (B, 1, C) f32."""
    B, L, _ = cond.shape
    C = params["w2_gamma"].shape[1]

    # Explicit VMEM budget: weights (+double buffer), cond tile, outputs, slack.
    weight_bytes = 4 * (HIDDEN * 2 * HIDDEN + 2 * HIDDEN
                        + 2 * (HIDDEN * C + C))
    io_bytes = 4 * (L * HIDDEN + 2 * C)
    mlp_vmem = max(2 * (weight_bytes + io_bytes) + (8 << 20), 16 << 20)

    gm, bm = pl.pallas_call(
        _word_mlp_kernel,
        out_shape=(jax.ShapeDtypeStruct((B, 1, C), jnp.float32),
                   jax.ShapeDtypeStruct((B, 1, C), jnp.float32)),
        grid=(B,),
        in_specs=[
            pl.BlockSpec((pl.Squeezed(), L, HIDDEN), lambda b: (b, 0, 0)),
            pl.BlockSpec((HIDDEN, 2 * HIDDEN), lambda b: (0, 0)),
            pl.BlockSpec((1, 2 * HIDDEN), lambda b: (0, 0)),
            pl.BlockSpec((HIDDEN, C), lambda b: (0, 0)),
            pl.BlockSpec((1, C), lambda b: (0, 0)),
            pl.BlockSpec((HIDDEN, C), lambda b: (0, 0)),
            pl.BlockSpec((1, C), lambda b: (0, 0)),
        ],
        out_specs=[
            pl.BlockSpec((pl.Squeezed(), 1, C), lambda b: (b, 0, 0)),
            pl.BlockSpec((pl.Squeezed(), 1, C), lambda b: (b, 0, 0)),
        ],
        compiler_params=pltpu.CompilerParams(
            dimension_semantics=("parallel",),
            vmem_limit_bytes=int(mlp_vmem)),
    )(cond, params["w1"], params["b1"],
      params["w2_gamma"], params["b2_gamma"],
      params["w2_beta"], params["b2_beta"])
    return gm, bm


# ----------------- kernel 2: HBM-bound broadcast-FMA streamer ----------------

def _modulate_kernel(x_ref, gm_ref, bm_ref, o_ref):
    """out = gamma * x + beta on a (rows_blk, lanes_blk) tile.

    gm/bm are (rows_blk, 1): the per-row scalar broadcasts along lanes only
    (cheap lane splat - no XLU relayout in the hot loop).
    """
    x = x_ref[...].astype(gm_ref.dtype)
    o_ref[...] = (x * gm_ref[...] + bm_ref[...]).astype(o_ref.dtype)


def _block_budget_bytes():
    """~8 MiB x/o blocks on 128 MiB-VMEM parts (v5e/v6e), ~4 MiB on 64 MiB
    parts (v7x).  Falls back to the conservative choice if the query fails."""
    try:
        cap = pltpu.get_tpu_info().vmem_capacity_bytes
    except Exception:
        cap = 64 << 20
    return (8 << 20) if cap >= (128 << 20) else (4 << 20)


def _plan_tiles(rows, hw, itemsize, budget):
    """Pick a (row_blk, lane_blk) tile for the streamer.

    rows = B*C packed on the sublane axis; lanes = flattened H*W, always a
    multiple of 128 (the wrapper pads/slices the tail).  Block size targets
    `budget` bytes so the grid-step count stays small (HBM-roofline regime).
    """
    hw128 = _round_up(hw, 128)
    if rows % 8 == 0:
        r = min(rows, 256)                     # good sublane occupancy
        while rows % r:
            r -= 8
    else:
        r = rows                               # full-dim row block (legal)
    t_cap = max(128, (budget // (r * itemsize)) // 128 * 128)
    t_hw = min(hw128, t_cap)
    hw_pad = _round_up(hw, t_hw)
    return r, t_hw, hw_pad


# ------------------------------ Python wrapper -------------------------------

def affine_word_forward(x, y, params):
    """x: (B, C, H, W) (f32 or bf16),  y (cond): (B, L, 512) -> (B, C, H, W)."""
    B, C, H, W = x.shape
    Bc, L, D = y.shape
    assert Bc == B and D == HIDDEN
    HW = H * W
    rows = B * C
    itemsize = jnp.dtype(x.dtype).itemsize

    # 1) tiny per-batch MLP -> (B, C) mean gamma / beta (plain XLA would also
    #    do; kept in Pallas, it is negligible either way).
    gm, bm = _word_mlp(y.astype(jnp.float32), params)          # (B, 1, C) f32

    # bf16 FMA path when the feature map is bf16 (v6e/v7x bf16 VALU).
    fma_dtype = jnp.bfloat16 if x.dtype == jnp.bfloat16 else jnp.float32
    gm_rows = gm.reshape(rows, 1).astype(fma_dtype)            # row = b*C + c
    bm_rows = bm.reshape(rows, 1).astype(fma_dtype)

    # 2) streaming modulation over the 2-D (B*C, H*W) view.
    budget = _block_budget_bytes()
    r, t_hw, hw_pad = _plan_tiles(rows, HW, itemsize, budget)

    x_rows = x.reshape(rows, HW)
    if hw_pad != HW:                           # lane-pad the tail, slice after
        x_rows = jnp.pad(x_rows, ((0, 0), (0, hw_pad - HW)))

    grid = (rows // r, hw_pad // t_hw)
    # double-buffered x + o blocks, tiny gm/bm blocks, slack.
    stream_vmem = 4 * r * t_hw * itemsize + (4 << 20)

    out_rows = pl.pallas_call(
        _modulate_kernel,
        out_shape=jax.ShapeDtypeStruct((rows, hw_pad), x.dtype),
        grid=grid,
        in_specs=[
            pl.BlockSpec((r, t_hw), lambda i, j: (i, j)),      # x tile
            pl.BlockSpec((r, 1), lambda i, j: (i, 0)),         # gamma per row
            pl.BlockSpec((r, 1), lambda i, j: (i, 0)),         # beta per row
        ],
        out_specs=pl.BlockSpec((r, t_hw), lambda i, j: (i, j)),
        compiler_params=pltpu.CompilerParams(
            # fully parallel: no cross-step state, so megacore can shard
            # either axis (important for B == 1 on v7x).
            dimension_semantics=("parallel", "parallel"),
            vmem_limit_bytes=int(stream_vmem)),
    )(x_rows, gm_rows, bm_rows)

    return out_rows[:, :HW].reshape(B, C, H, W)


# ---------------------------------- params -----------------------------------

def init_params(key, num_features):
    """Params matching affine_word.__init__ / _initialize, with the two
    first-layer Linears pre-packed as [gamma | beta] along the output axis."""
    k1, k2, k3, k4 = jax.random.split(key, 4)
    bound = 1.0 / jnp.sqrt(jnp.float32(HIDDEN))
    w1_g = jax.random.uniform(k1, (HIDDEN, HIDDEN), jnp.float32, -bound, bound)
    b1_g = jax.random.uniform(k2, (1, HIDDEN), jnp.float32, -bound, bound)
    w1_b = jax.random.uniform(k3, (HIDDEN, HIDDEN), jnp.float32, -bound, bound)
    b1_b = jax.random.uniform(k4, (1, HIDDEN), jnp.float32, -bound, bound)
    return {
        "w1": jnp.concatenate([w1_g, w1_b], axis=1),      # (512, 1024)
        "b1": jnp.concatenate([b1_g, b1_b], axis=1),      # (1, 1024)
        # _initialize(): gamma.linear2 -> weight 0, bias 1 ; beta.linear2 -> 0
        "w2_gamma": jnp.zeros((HIDDEN, num_features), jnp.float32),
        "b2_gamma": jnp.ones((1, num_features), jnp.float32),
        "w2_beta":  jnp.zeros((HIDDEN, num_features), jnp.float32),
        "b2_beta":  jnp.zeros((1, num_features), jnp.float32),
    }


# --------------------------------- reference ----------------------------------

def affine_word_reference(x, y, p):
    """Pure-JAX replica of the PyTorch forward (expand + sum over L / L)."""
    B, C, H, W = x.shape
    L = y.shape[1]
    cond = y.reshape(-1, HIDDEN).astype(jnp.float32)
    h = jnp.maximum(cond @ p["w1"] + p["b1"], 0.0)              # (B*L, 1024)
    gamma = (h[:, :HIDDEN] @ p["w2_gamma"] + p["b2_gamma"]).reshape(B, L, C)
    beta = (h[:, HIDDEN:] @ p["w2_beta"] + p["b2_beta"]).reshape(B, L, C)
    w = gamma[:, :, :, None, None]
    b = beta[:, :, :, None, None]
    xe = x.astype(jnp.float32)[:, None, :, :, :]
    return jnp.sum(w * xe + b, axis=1) / L                      # (B, C, H, W)


# ----------------------------------- main --------------------------------------

if __name__ == "__main__":
    keys = jax.random.split(jax.random.PRNGKey(0), 10)

    # Case 1: small aligned shapes (B=2, C=4, 16x16, L=8).
    B, C, H, W, L = 2, 4, 16, 16, 8
    params = init_params(keys[0], num_features=C)
    # Perturb the _initialize()-zeroed second layers so the correctness check
    # exercises the full MLP + modulation path (not just gamma=1 / beta=0).
    params["w2_gamma"] = params["w2_gamma"] + 0.05 * jax.random.normal(keys[1], (HIDDEN, C), jnp.float32)
    params["w2_beta"] = params["w2_beta"] + 0.05 * jax.random.normal(keys[2], (HIDDEN, C), jnp.float32)
    x = jax.random.normal(keys[3], (B, C, H, W), jnp.float32)
    y = jax.random.normal(keys[4], (B, L, HIDDEN), jnp.float32)

    out = jax.block_until_ready(affine_word_forward(x, y, params))
    ref = affine_word_reference(x, y, params)
    assert out.shape == (B, C, H, W)
    assert jnp.allclose(out, ref, atol=1e-4, rtol=1e-4), "mismatch vs reference (case 1)"

    # Case 2: B=1, C multiple of 8, non-128-aligned spatial extent (17x17) and
    # L not a multiple of 8 -> exercises lane padding, row packing and the
    # fully-parallel grid with a single batch.
    B2, C2, H2, W2, L2 = 1, 32, 17, 17, 5
    params2 = init_params(keys[5], num_features=C2)
    params2["w2_gamma"] = params2["w2_gamma"] + 0.05 * jax.random.normal(keys[6], (HIDDEN, C2), jnp.float32)
    params2["w2_beta"] = params2["w2_beta"] + 0.05 * jax.random.normal(keys[7], (HIDDEN, C2), jnp.float32)
    x2 = jax.random.normal(keys[8], (B2, C2, H2, W2), jnp.float32)
    y2 = jax.random.normal(keys[9], (B2, L2, HIDDEN), jnp.float32)

    out2 = jax.block_until_ready(affine_word_forward(x2, y2, params2))
    ref2 = affine_word_reference(x2, y2, params2)
    assert out2.shape == (B2, C2, H2, W2)
    assert jnp.allclose(out2, ref2, atol=1e-4, rtol=1e-4), "mismatch vs reference (case 2)"

    print("KERNEL_OK")
</pallas_src>

<mosaic_0001>
module attributes {stable_mosaic.version = 11 : i64} {
  func.func @_word_mlp_kernel(%arg0: i32, %arg1: memref<1x8x512xf32, #tpu.memory_space<vmem>>, %arg2: memref<512x1024xf32, #tpu.memory_space<vmem>>, %arg3: memref<1x1024xf32, #tpu.memory_space<vmem>>, %arg4: memref<512x4xf32, #tpu.memory_space<vmem>>, %arg5: memref<1x4xf32, #tpu.memory_space<vmem>>, %arg6: memref<512x4xf32, #tpu.memory_space<vmem>>, %arg7: memref<1x4xf32, #tpu.memory_space<vmem>>, %arg8: memref<1x1x4xf32, #tpu.memory_space<vmem>>, %arg9: memref<1x1x4xf32, #tpu.memory_space<vmem>>) attributes {dimension_semantics = [#tpu.dimension_semantics<parallel>], iteration_bounds = array<i64: 2>, scalar_prefetch = 0 : i64, scratch_operands = 0 : i64, tpu.core_type = #tpu.core_type<tc>, window_params = [{transform_indices = @transform_0, window_bounds = array<i64: 1, 8, 512>}, {pipeline_mode = #tpu.pipeline_mode<synchronous>, transform_indices = @transform_1, window_bounds = array<i64: 512, 1024>}, {pipeline_mode = #tpu.pipeline_mode<synchronous>, transform_indices = @transform_2, window_bounds = array<i64: 1, 1024>}, {pipeline_mode = #tpu.pipeline_mode<synchronous>, transform_indices = @transform_3, window_bounds = array<i64: 512, 4>}, {pipeline_mode = #tpu.pipeline_mode<synchronous>, transform_indices = @transform_4, window_bounds = array<i64: 1, 4>}, {pipeline_mode = #tpu.pipeline_mode<synchronous>, transform_indices = @transform_5, window_bounds = array<i64: 512, 4>}, {pipeline_mode = #tpu.pipeline_mode<synchronous>, transform_indices = @transform_6, window_bounds = array<i64: 1, 4>}, {transform_indices = @transform_7, window_bounds = array<i64: 1, 1, 4>}, {transform_indices = @transform_8, window_bounds = array<i64: 1, 1, 4>}]} {
    %c0 = arith.constant 0 : index
    %c0_0 = arith.constant 0 : index
    %c0_1 = arith.constant 0 : index
    %0 = vector.load %arg1[%c0, %c0_0, %c0_1] : memref<1x8x512xf32, #tpu.memory_space<vmem>>, vector<1x8x512xf32>
    %1 = vector.shape_cast %0 : vector<1x8x512xf32> to vector<8x512xf32>
    %c0_2 = arith.constant 0 : index
    %c0_3 = arith.constant 0 : index
    %2 = vector.load %arg2[%c0_2, %c0_3] : memref<512x1024xf32, #tpu.memory_space<vmem>>, vector<512x1024xf32>
    %cst = arith.constant dense<0.000000e+00> : vector<8x1024xf32>
    %3 = tpu.matmul %1, %2, %cst {dimension_numbers = #tpu.dot_dimension_numbers<[1], [0], [0], [1], [0, 0, 1, 1], [], []>} : vector<8x512xf32>, vector<512x1024xf32>, vector<8x1024xf32> -> vector<8x1024xf32>
    %c0_4 = arith.constant 0 : index
    %c0_5 = arith.constant 0 : index
    %4 = vector.load %arg3[%c0_4, %c0_5] : memref<1x1024xf32, #tpu.memory_space<vmem>>, vector<1x1024xf32>
    %5 = vector.broadcast %4 : vector<1x1024xf32> to vector<8x1024xf32>
    %6 = arith.addf %3, %5 : vector<8x1024xf32>
    %cst_6 = arith.constant 0.000000e+00 : f32
    %7 = vector.broadcast %cst_6 : f32 to vector<8x1024xf32>
    %8 = arith.maximumf %6, %7 : vector<8x1024xf32>
    %cst_7 = arith.constant dense<0.000000e+00> : vector<1024xf32>
    %9 = vector.multi_reduction <add>, %8, %cst_7 [0] : vector<8x1024xf32> to vector<1024xf32>
    %10 = vector.shape_cast %9 : vector<1024xf32> to vector<1x1024xf32>
    %cst_8 = arith.constant 1.250000e-01 : f32
    %11 = vector.broadcast %cst_8 : f32 to vector<1x1024xf32>
    %12 = arith.mulf %10, %11 : vector<1x1024xf32>
    %13 = vector.extract_strided_slice %12 {offsets = [0, 0], sizes = [1, 512], strides = [1, 1]} : vector<1x1024xf32> to vector<1x512xf32>
    %c0_9 = arith.constant 0 : index
    %c0_10 = arith.constant 0 : index
    %14 = vector.load %arg4[%c0_9, %c0_10] : memref<512x4xf32, #tpu.memory_space<vmem>>, vector<512x4xf32>
    %cst_11 = arith.constant dense<0.000000e+00> : vector<1x4xf32>
    %15 = tpu.matmul %13, %14, %cst_11 {dimension_numbers = #tpu.dot_dimension_numbers<[1], [0], [0], [1], [0, 0, 1, 1], [], []>} : vector<1x512xf32>, vector<512x4xf32>, vector<1x4xf32> -> vector<1x4xf32>
    %c0_12 = arith.constant 0 : index
    %c0_13 = arith.constant 0 : index
    %16 = vector.load %arg5[%c0_12, %c0_13] : memref<1x4xf32, #tpu.memory_space<vmem>>, vector<1x4xf32>
    %17 = arith.addf %15, %16 : vector<1x4xf32>
    %c0_14 = arith.constant 0 : index
    %c0_15 = arith.constant 0 : index
    %c0_16 = arith.constant 0 : index
    %18 = vector.load %arg8[%c0_14, %c0_15, %c0_16] : memref<1x1x4xf32, #tpu.memory_space<vmem>>, vector<1x1x4xf32>
    %19 = vector.shape_cast %18 : vector<1x1x4xf32> to vector<1x4xf32>
    %20 = vector.shape_cast %17 : vector<1x4xf32> to vector<1x1x4xf32>
    tpu.vector_store %arg8[%c0_14, %c0_15, %c0_16], %20 {strides = array<i32>} : memref<1x1x4xf32, #tpu.memory_space<vmem>>, vector<1x1x4xf32>,
    %21 = vector.extract_strided_slice %12 {offsets = [0, 512], sizes = [1, 512], strides = [1, 1]} : vector<1x1024xf32> to vector<1x512xf32>
    %c0_17 = arith.constant 0 : index
    %c0_18 = arith.constant 0 : index
    %22 = vector.load %arg6[%c0_17, %c0_18] : memref<512x4xf32, #tpu.memory_space<vmem>>, vector<512x4xf32>
    %cst_19 = arith.constant dense<0.000000e+00> : vector<1x4xf32>
    %23 = tpu.matmul %21, %22, %cst_19 {dimension_numbers = #tpu.dot_dimension_numbers<[1], [0], [0], [1], [0, 0, 1, 1], [], []>} : vector<1x512xf32>, vector<512x4xf32>, vector<1x4xf32> -> vector<1x4xf32>
    %c0_20 = arith.constant 0 : index
    %c0_21 = arith.constant 0 : index
    %24 = vector.load %arg7[%c0_20, %c0_21] : memref<1x4xf32, #tpu.memory_space<vmem>>, vector<1x4xf32>
    %25 = arith.addf %23, %24 : vector<1x4xf32>
    %c0_22 = arith.constant 0 : index
    %c0_23 = arith.constant 0 : index
    %c0_24 = arith.constant 0 : index
    %26 = vector.load %arg9[%c0_22, %c0_23, %c0_24] : memref<1x1x4xf32, #tpu.memory_space<vmem>>, vector<1x1x4xf32>
    %27 = vector.shape_cast %26 : vector<1x1x4xf32> to vector<1x4xf32>
    %28 = vector.shape_cast %25 : vector<1x4xf32> to vector<1x1x4xf32>
    tpu.vector_store %arg9[%c0_22, %c0_23, %c0_24], %28 {strides = array<i32>} : memref<1x1x4xf32, #tpu.memory_space<vmem>>, vector<1x1x4xf32>,
    return
  }
  func.func @transform_0(%arg0: i32) -> (i32, i32, i32) {
    %c0_i32 = arith.constant 0 : i32
    %c0_i32_0 = arith.constant 0 : i32
    %c0_i32_1 = arith.constant 0 : i32
    return %arg0, %c0_i32, %c0_i32_0 : i32, i32, i32
  }
  func.func @transform_1(%arg0: i32) -> (i32, i32) {
    %c0_i32 = arith.constant 0 : i32
    %c0_i32_0 = arith.constant 0 : i32
    %c0_i32_1 = arith.constant 0 : i32
    return %c0_i32, %c0_i32_0 : i32, i32
  }
  func.func @transform_2(%arg0: i32) -> (i32, i32) {
    %c0_i32 = arith.constant 0 : i32
    %c0_i32_0 = arith.constant 0 : i32
    %c0_i32_1 = arith.constant 0 : i32
    return %c0_i32, %c0_i32_0 : i32, i32
  }
  func.func @transform_3(%arg0: i32) -> (i32, i32) {
    %c0_i32 = arith.constant 0 : i32
    %c0_i32_0 = arith.constant 0 : i32
    %c0_i32_1 = arith.constant 0 : i32
    return %c0_i32, %c0_i32_0 : i32, i32
  }
  func.func @transform_4(%arg0: i32) -> (i32, i32) {
    %c0_i32 = arith.constant 0 : i32
    %c0_i32_0 = arith.constant 0 : i32
    %c0_i32_1 = arith.constant 0 : i32
    return %c0_i32, %c0_i32_0 : i32, i32
  }
  func.func @transform_5(%arg0: i32) -> (i32, i32) {
    %c0_i32 = arith.constant 0 : i32
    %c0_i32_0 = arith.constant 0 : i32
    %c0_i32_1 = arith.constant 0 : i32
    return %c0_i32, %c0_i32_0 : i32, i32
  }
  func.func @transform_6(%arg0: i32) -> (i32, i32) {
    %c0_i32 = arith.constant 0 : i32
    %c0_i32_0 = arith.constant 0 : i32
    %c0_i32_1 = arith.constant 0 : i32
    return %c0_i32, %c0_i32_0 : i32, i32
  }
  func.func @transform_7(%arg0: i32) -> (i32, i32, i32) {
    %c0_i32 = arith.constant 0 : i32
    %c0_i32_0 = arith.constant 0 : i32
    %c0_i32_1 = arith.constant 0 : i32
    return %arg0, %c0_i32, %c0_i32_0 : i32, i32, i32
  }
  func.func @transform_8(%arg0: i32) -> (i32, i32, i32) {
    %c0_i32 = arith.constant 0 : i32
    %c0_i32_0 = arith.constant 0 : i32
    %c0_i32_1 = arith.constant 0 : i32
    return %arg0, %c0_i32, %c0_i32_0 : i32, i32, i32
  }
}

</mosaic_0001>

<bundles_post_ra>
// kernel: tpu_custom_call.1
= control target key start
LH: loop header
LB: loop body
LE: loop exit
PB: predicated region body
PF: predicated region fallthrough
CT: control target
= control target key end

     0   :  { %s4101_s0 = inlined_call_operand.hbm [shape: f32[2,8,512], index: 0, kind: input, shape index: {}]   ;;  %s4102_s1 = inlined_call_operand.hbm [shape: f32[512,1024], index: 1, kind: input, shape index: {}]   ;;  %s4103_s2 = inlined_call_operand.hbm [shape: f32[1,1024], index: 2, kind: input, shape index: {}]   ;;  %s4104_s3 = inlined_call_operand.vmem [shape: f32[512,4], index: 3, kind: input, shape index: {}]   ;;  %s4105_s4 = inlined_call_operand.hbm [shape: f32[1,4], index: 4, kind: input, shape index: {}]   ;;  %s4106_s5 = inlined_call_operand.vmem [shape: f32[512,4], index: 5, kind: input, shape index: {}]   ;;  %s4107_s6 = inlined_call_operand.hbm [shape: f32[1,4], index: 6, kind: input, shape index: {}]   ;;  %s4108_s7 = inlined_call_operand.hbm [shape: f32[2,1,4], index: 7, kind: output, shape index: {0}]   ;;  %s4109_s8 = inlined_call_operand.hbm [shape: f32[2,1,4], index: 8, kind: output, shape index: {1}]  }
   0x1   :  { %4113 = sst [smem:[#allocation19_spill]] %s4102_s1 }
   0x2   :  { %14 = vsyncpa [#allocation3], 0 }
   0x3   :  { %16 = vsyncpa [#allocation3 + $0x1], 0 }
   0x4   :  { %17 = vsyncpa [#allocation6], 0 }
   0x5   :  { %18 = vsyncpa [#allocation9], 0 }
   0x6   :  { %19 = vsyncpa [#allocation4], 0 }
   0x7   :  { %21 = vsyncpa [#allocation4 + $0x1], 0 }
   0x8   :  { %22 = vsyncpa [#allocation13], 0 }
   0x9   :  { %24 = vsyncpa [#allocation13 + $0x1], 0  ;;  %s3365_s27 = smov 0   ;;  %s3367_s28 = smov 0  }
   0xa   :  { %s3369_s29 = smov 0   ;;  %s3371_s30 = smov 0  }
   0xb LB: > { %s3311_s9 = smov [#allocation5]   ;;  %s3386_s11 = sadd.s32 4294967295, %s3309_s30   ;;  %s3309_s30 = sphi %s3371_s30, %s4135_s30   ;;  %s3305_s29 = sphi %s3369_s29, %s4134_s29   ;;  %s3301_s28 = sphi %s3367_s28, %s4133_s28   ;;  %s3297_s27 = sphi %s3365_s27, %s4132_s27  }
   0xc   : > { %s251_s10 = sshll.u32 %s3311_s9, 4  ;;  %p2149_p0 = scmp.ge.s32.totalorder %s3309_s30, 1  ;;  %s3391_s10 = int_to_ptr.vmem [resolvable:$true] %s251_s10 }
   0xd   : > { %p4110_p1 = scmp.eq.s32.totalorder %s3386_s11, 0  ;;  %p239_p2 = scmp.lt.s32.totalorder %s3309_s30, 3 }
   0xe   : > { %s3312_s13 = smov [#allocation8]   ;;  %s3313_s16 = smov [#allocation7]  }
   0xf   : > { %p3393_p3 = pnand %p2149_p0, %p239_p2  ;;  %s279_s14 = sshll.u32 %s3312_s13, 4  ;;  %s3406_s14 = int_to_ptr.vmem [resolvable:$true] %s279_s14 }
  0x10   : > { %s265_s17 = sshll.u32 %s3313_s16, 4  ;;  %s4116_s1 = sld [smem:[#allocation19_spill]]  ;;  %s3408_s17 = int_to_ptr.vmem [resolvable:$true] %s265_s17 }
  0x11   : > { %s4114_s12 = scalar_select %p3393_p3, 1, 0 }
  0x12   : > { %p2987_p5 = pneg %p3393_p3 }
  0x14   : > { %p3402_p6 = pnand %p2987_p5, %p4110_p1 }
  0x16   : > { %s3061_s20 = scalar_lea.hbm %s4116_s1, 65536  ;;  %p3418_p8 = pneg %p3402_p6 }
  0x17   : > { %p3062_p7 = scmp.ne.s32.totalorder %s4116_s1, %s3061_s20  ;;  %p3068_p11 = scmp.lt.u32.totalorder %s3061_s20, %s4116_s1 }
  0x19   : > { %p3064_p9 = pnand %p3418_p8, %p3062_p7 }
  0x1b   : > { %p3065_p10 = pneg %p3064_p9 }
  0x1d   : > { %p3070_p12 = pnand %p3068_p11, %p3065_p10 }
  0x1f   : > { %3073 = shalt.err (!%p3070_p12)
}
  0x20   : > { %s3074_s26 = scalar_lea.vmem %s3391_s10, 65536  ;;  %p3082_p5 = scmp.lt.s32.totalorder %s3391_s10, %s3391_s10 }
  0x21   : > { %p3075_p13 = scmp.ne.s32.totalorder %s3391_s10, %s3074_s26  ;;  %p3083_p4 = scmp.lt.s32.totalorder %s3074_s26, %s3074_s26 }
  0x23   : > { %p3077_p0 = pnand %p3075_p13, %p3418_p8  ;;  %p3084_p7 = por %p3083_p4, %p3082_p5 }
  0x25   : > { %p3078_p2 = pneg %p3077_p0 }
  0x27   : > { %p3085_p9 = pnand %p3084_p7, %p3078_p2 }
  0x29   : > { %3088 = shalt.err (!%p3085_p9)
}
  0x2a   : > { %s3314_s9 = smov 1024   ;;  %s3315_s13 = smov 64  }
  0x2b   : > { %2990 = dma.hbm_to_vmem [thread:$0]  (!%p3402_p6), %s4116_s1, 65536, %s3391_s10, [#allocation6], %s3314_s9, %s3314_s9, %s3315_s13  }
  0x2c   : > { %s3089_s21 = scalar_lea.hbm %s4105_s4, 16 }
  0x2d   : > { %p3090_p4 = scmp.ne.s32.totalorder %s4105_s4, %s3089_s21  ;;  %p3096_p12 = scmp.lt.u32.totalorder %s3089_s21, %s4105_s4 }
  0x2f   : > { %p3092_p10 = pnand %p3090_p4, %p3418_p8 }
  0x31   : > { %p3093_p11 = pneg %p3092_p10 }
  0x33   : > { %p3098_p13 = pnand %p3096_p12, %p3093_p11 }
  0x35   : > { %3101 = shalt.err (!%p3098_p13)
}
  0x36   : > { %s3102_s10 = scalar_lea.vmem %s3406_s14, 16  ;;  %s3109_s9 = scalar_lea.vmem %s3406_s14, 32 }
  0x37   : > { %p3103_p0 = scmp.ne.s32.totalorder %s3406_s14, %s3102_s10  ;;  %p3110_p7 = scmp.lt.s32.totalorder %s3406_s14, %s3406_s14 }
  0x38   : > { %p3111_p9 = scmp.lt.s32.totalorder %s3109_s9, %s3102_s10 }
  0x39   : > { %p3105_p2 = pnand %p3103_p0, %p3418_p8 }
  0x3a   : > { %p3112_p4 = por %p3111_p9, %p3110_p7 }
  0x3b   : > { %p3106_p5 = pneg %p3105_p2 }
  0x3d   : > { %p3113_p10 = pnand %p3112_p4, %p3106_p5 }
  0x3f   : > { %3116 = shalt.err (!%p3113_p10)
}
  0x40   : > { %2996 = dma.hbm_to_vmem [thread:$0]  (!%p3402_p6), %s4105_s4, 16, %s3406_s14, [#allocation9]  }
  0x41   : > { %s3117_s20 = scalar_lea.hbm %s4103_s2, 128 }
  0x42   : > { %p3118_p11 = scmp.ne.s32.totalorder %s4103_s2, %s3117_s20  ;;  %p3124_p0 = scmp.lt.u32.totalorder %s3117_s20, %s4103_s2 }
  0x44   : > { %p3120_p12 = pnand %p3118_p11, %p3418_p8 }
  0x46   : > { %p3121_p13 = pneg %p3120_p12 }
  0x48   : > { %p3126_p2 = pnand %p3124_p0, %p3121_p13 }
  0x4a   : > { %3129 = shalt.err (!%p3126_p2)
}
  0x4b   : > { %s3130_s14 = scalar_lea.vmem %s3408_s17, 128  ;;  %p3138_p4 = scmp.lt.s32.totalorder %s3408_s17, %s3408_s17 }
  0x4c   : > { %p3131_p5 = scmp.ne.s32.totalorder %s3408_s17, %s3130_s14  ;;  %p3139_p10 = scmp.lt.s32.totalorder %s3130_s14, %s3130_s14 }
  0x4e   : > { %p3133_p7 = pnand %p3131_p5, %p3418_p8  ;;  %p3140_p11 = por %p3139_p10, %p3138_p4 }
  0x50   : > { %p3134_p9 = pneg %p3133_p7 }
  0x52   : > { %p3141_p12 = pnand %p3140_p11, %p3134_p9 }
  0x54   : > { %3144 = shalt.err (!%p3141_p12)
}
  0x55   : > { %2993 = dma.hbm_to_vmem [thread:$0]  (!%p3402_p6), %s4103_s2, 128, %s3408_s17, [#allocation6]  }
  0x56   : > { %s3316_s9 = smov [#allocation10]   ;;  %s3145_s19 = scalar_lea.hbm %s4107_s6, 16 }
  0x57   : > { %s293_s13 = sshll.u32 %s3316_s9, 4  ;;  %p3146_p13 = scmp.ne.s32.totalorder %s4107_s6, %s3145_s19  ;;  %s294_s13 = int_to_ptr.vmem [resolvable:$true] %s293_s13 }
  0x58   : > { %p3152_p5 = scmp.lt.u32.totalorder %s3145_s19, %s4107_s6 }
  0x59   : > { %p3148_p0 = pnand %p3146_p13, %p3418_p8 }
  0x5b   : > { %p3149_p2 = pneg %p3148_p0 }
  0x5d   : > { %p3154_p7 = pnand %p3152_p5, %p3149_p2 }
  0x5f   : > { %3157 = shalt.err (!%p3154_p7)
}
  0x60   : > { %s3158_s17 = scalar_lea.vmem %s294_s13, 16  ;;  %s3165_s25 = scalar_lea.vmem %s294_s13, 32 }
  0x61   : > { %p3159_p9 = scmp.ne.s32.totalorder %s294_s13, %s3158_s17  ;;  %p3166_p11 = scmp.lt.s32.totalorder %s294_s13, %s294_s13 }
  0x62   : > { %p3167_p12 = scmp.lt.s32.totalorder %s3165_s25, %s3158_s17 }
  0x63   : > { %p3161_p4 = pnand %p3159_p9, %p3418_p8 }
  0x64   : > { %p3168_p1 = por %p3167_p12, %p3166_p11 }
  0x65   : > { %p3162_p10 = pneg %p3161_p4 }
  0x67   : > { %p3169_p3 = pnand %p3168_p1, %p3162_p10 }
  0x69   : > { %3172 = shalt.err (!%p3169_p3)
}
  0x6a   : > { %2999 = dma.hbm_to_vmem [thread:$0]  (!%p3402_p6), %s4107_s6, 16, %s294_s13, [#allocation9]  }
  0x6b   : > { %s2148_s23 = sadd.s32 4294967294, %s3309_s30   ;;  %s3506_s15 = sadd.s32 1, %s3309_s30  }
  0x6c   : > { %s34_s10 = ssub.s32 %s3309_s30, %s3506_s15  ;;  %s37_s9 = sadd.s32 1, %s3305_s29 }
  0x6d   : > { %p35_p1 = scmp.eq.s32.totalorder %s34_s10, 0  ;;  %p44_p3 = scmp.ne.s32.totalorder %s3305_s29, %s3301_s28 }
  0x6e   : > { %p45_p8 = scmp.eq.s32.totalorder %s3309_s30, 0  ;;  %p50_p13 = scmp.ne.s32.totalorder %s3301_s28, %s3297_s27 }
  0x6f   : > { %s3517_s16 = scalar_select %p35_p1, %s3305_s29, %s37_s9  }
  0x70   : > { %p3519_p0 = por %p45_p8, %p44_p3  ;;  %p4119_p2 = scmp.eq.s32.totalorder %s3386_s11, 0 }
  0x71   : > { %p200_p5 = scmp.eq.s32.totalorder %s3386_s11, 1  ;;  %p206_p7 = scmp.eq.s32.totalorder %s2148_s23, 1 }
  0x72   : > { %p3525_p6 = por %p4119_p2, %p50_p13  ;;  %p3015_p9 = scmp.lt.s32.totalorder %s3309_s30, 2 }
  0x73   : > { %s304_s19 = sand.u32 1, %s3305_s29   ;;  %p3532_p4 = por %p200_p5, %p44_p3 }
  0x74   : > { %p3536_p10 = por %p206_p7, %p50_p13  ;;  %s2155_s22 = sshll.u32 %s304_s19, 5 }
  0x75   : > { %s4121_s20 = scalar_select %p3532_p4, 1, 0 }
  0x76   : > { %s4122_s21 = scalar_select %p3536_p10, 1, 0 }
  0x77   : > { %s2168_s24 = sshll.u32 %s3309_s30, 9  ;;  %s308_s26 = scalar_lea.vmem [#allocation2], %s2155_s22 }
  0x78   : > { %s3544_s14 = scalar_lea.hbm %s4101_s0, %s2168_s24  ;;  %s316_s23 = sshll.u32 %s308_s26, 4  ;;  %s3546_s23 = int_to_ptr.vmem [resolvable:$true] %s316_s23 }
  0x79   : > { %p3550_p11 = pnand %p3015_p9, %p3519_p0  ;;  %s305_s9 = scalar_lea.sflag [#allocation3], %s304_s19 }
  0x7a   : > { %s3173_s1 = scalar_lea.hbm %s3544_s14, 512  ;;  %s3178_s17 = scalar_lea.hbm %s4101_s0, 1024 }
  0x7b   : > { %p3174_p12 = scmp.ne.s32.totalorder %s3544_s14, %s3173_s1  ;;  %p3175_p1 = pneg %p3550_p11 }
  0x7c   : > { %p3179_p13 = scmp.lt.u32.totalorder %s3544_s14, %s4101_s0  ;;  %p3180_p0 = scmp.lt.u32.totalorder %s3178_s17, %s3173_s1 }
  0x7d   : > { %p3176_p3 = pnand %p3175_p1, %p3174_p12  ;;  %p3182_p5 = scmp.lt.u32.totalorder %s3173_s1, %s3544_s14 }
  0x7e   : > { %p3181_p2 = por %p3180_p0, %p3179_p13 }
  0x7f   : > { %p3177_p8 = pneg %p3176_p3 }
  0x80   : > { %p3183_p7 = por %p3182_p5, %p3181_p2 }
  0x82   : > { %p3184_p9 = pnand %p3183_p7, %p3177_p8 }
  0x84   : > { %3187 = shalt.err (!%p3184_p9)
}
  0x85   : > { %s3188_s19 = scalar_lea.vmem %s3546_s23, 512  ;;  %s3317_s26 = smov [#allocation2]  }
  0x86   : > { %p3189_p12 = scmp.ne.s32.totalorder %s3546_s23, %s3188_s19  ;;  %s3193_s22 = sshll.u32 %s3317_s26, 4  ;;  %s3194_s22 = int_to_ptr.vmem [resolvable:$false] %s3193_s22 }
  0x87   : > { %s3195_s24 = scalar_lea.vmem %s3194_s22, 1024  ;;  %p3196_p4 = scmp.lt.s32.totalorder %s3546_s23, %s3194_s22 }
  0x88   : > { %p3191_p3 = pnand %p3189_p12, %p3175_p1  ;;  %p3197_p13 = scmp.lt.s32.totalorder %s3195_s24, %s3188_s19 }
  0x8a   : > { %p3192_p10 = pneg %p3191_p3  ;;  %p3198_p0 = por %p3197_p13, %p3196_p4 }
  0x8c   : > { %p3199_p2 = pnand %p3198_p0, %p3192_p10 }
  0x8e   : > { %3202 = shalt.err (!%p3199_p2)
}
  0x8f   : > { %3003 = dma.hbm_to_vmem [thread:$0]  (!%p3550_p11), %s3544_s14, 512, %s3546_s23, %s305_s9  }
  0x90   : > { %p4124_p8 = scmp.ne.s32.totalorder %s4114_s12, 0 }
  0x91   : > { %s3582_s1 = sand.u32 (!%p4124_p8), 1, %s3301_s28  }
  0x92   : > { %325 = sbr.rel (%p4124_p8) target bundleno = 885 (0x375), region = 48  ;;  %s2159_s17 = sshll.u32 (!%p4124_p8), %s3582_s1, 5 }
  0x93   : > { %s328_s18 = scalar_lea.sflag (!%p4124_p8), [#allocation3], %s3582_s1  ;;  %s3586_s25 = scalar_lea.vmem (!%p4124_p8), [#allocation2], %s2159_s17 }
  0x99   : > { %3276 = dma.done.wait (%p3525_p6), %s328_s18, 512  }
  0x9a   : > { %3278 = vsyncadd (%p3525_p6), %s328_s18, 4294966784  ;;  %p4125_p4 = scmp.eq.s32.totalorder %s3386_s11, 0 }
  0x9c   : > { %3280 = dma.done.wait (%p4125_p4), [#allocation6], 65664   ;;  %p4126_p10 = pmov %p4125_p4 }
  0x9d   : > { %p4127_p11 = pmov %p4125_p4 }
  0x9e   : > { %3282 = vsyncadd (%p4126_p10), [#allocation6], 4294901632 }
  0x9f   : > { %3284 = dma.done.wait (%p4127_p11), [#allocation9], 32   ;;  %p4128_p1 = pmov %p4125_p4 }
  0xa0   : > { %v388_v0 = vld [vmem:[#allocation5 + $0x8] sm:$0xff]  ;;  %v390_v2 = vld [vmem:[#allocation5 + $0x18] sm:$0xff]  ;;  %v387_v5 = vld [vmem:[#allocation5] sm:$0xff]  ;;  %vm1778_vm0 = vcmask 24576   ;;  %s2164_s18 = sshll.u32 %s3386_s11, 4  ;;  %s376_s23 = scalar_lea.vmem [#allocation11], %s3582_s1 }
  0xa1   : > { %3286 = vsyncadd (%p4128_p1), [#allocation9], 4294967264  ;;  %v396_v1 = vld [vmem:[#allocation5 + $0x48] sm:$0xff]  ;;  %v398_v4 = vld [vmem:[#allocation5 + $0x58] sm:$0xff]  ;;  %s4028_s14 = scalar_lea.hbm %s4108_s7, %s2164_s18  ;;  %s2003_s10 = sshll.u32 %s376_s23, 4  ;;  %s2004_s10 = int_to_ptr.vmem [resolvable:$true] %s2003_s10 }
  0xa2   : > { %v2309_v3 = vpack.c.bf16 %v396_v1, %v388_v0  ;;  %v395_v6 = vld [vmem:[#allocation5 + $0x40] sm:$0xff]  ;;  %v2437_v7 = vpack.c.bf16 %v398_v4, %v390_v2  ;;  %v389_v9 = vld [vmem:[#allocation5 + $0x10] sm:$0xff]  ;;  %v404_v11 = vld [vmem:[#allocation5 + $0x88] sm:$0xff]  ;;  %s1987_s9 = scalar_lea.sflag [#allocation4], %s3582_s1  ;;  %p4129_p5 = scmp.ne.s32.totalorder %s4121_s20, 0 }
  0xa3   : > { %v2311_v8 = vpack.c.bf16 %v395_v6, %v387_v5  ;;  %v397_v10 = vld [vmem:[#allocation5 + $0x50] sm:$0xff]  ;;  %v412_v13 = vld [vmem:[#allocation5 + $0xc8] sm:$0xff]  ;;  %v406_v14 = vld [vmem:[#allocation5 + $0x98] sm:$0xff]  ;;  %s3318_s19 = smov [#allocation11]  }
  0xa4   : > { %2310 = vmatprep.subr.bf16.mxu0 %v2309_v3  ;;  %v2439_v12 = vpack.c.bf16 %v397_v10, %v389_v9  ;;  %v414_v15 = vld [vmem:[#allocation5 + $0xd8] sm:$0xff]  ;;  %2438 = vmatprep.subr.bf16.mxu1 %v2437_v7  ;;  %v2313_v16 = vpack.c.bf16 %v412_v13, %v404_v11  ;;  %v403_v18 = vld [vmem:[#allocation5 + $0x80] sm:$0xff]  ;;  %v405_v20 = vld [vmem:[#allocation5 + $0x90] sm:$0xff]  ;;  %s3207_s26 = sshll.u32 %s3318_s19, 4  ;;  %s3208_s26 = int_to_ptr.vmem [resolvable:$false] %s3207_s26 }
  0xa5   : > { %2312 = vmatpush1.bf16.msra.mxu0 %v2311_v8  ;;  %v2441_v17 = vpack.c.bf16 %v414_v15, %v406_v14  ;;  %v411_v19 = vld [vmem:[#allocation5 + $0xc0] sm:$0xff]  ;;  %v413_v22 = vld [vmem:[#allocation5 + $0xd0] sm:$0xff]  ;;  %v420_v23 = vld [vmem:[#allocation5 + $0x108] sm:$0xff]  ;;  %s3209_s22 = scalar_lea.vmem %s3208_s26, 32  ;;  %p3210_p12 = scmp.lt.s32.totalorder %s2004_s10, %s3208_s26 }
  0xa6   : > { %2440 = vmatpush1.bf16.msra.mxu1 %v2439_v12  ;;  %v2315_v21 = vpack.c.bf16 %v411_v19, %v403_v18  ;;  %v428_v24 = vld [vmem:[#allocation5 + $0x148] sm:$0xff]  ;;  %2314 = vmatprep.subr.bf16.mxu0 %v2313_v16  ;;  %v2443_v25 = vpack.c.bf16 %v413_v22, %v405_v20  ;;  %v422_v27 = vld [vmem:[#allocation5 + $0x118] sm:$0xff]  ;;  %v419_v29 = vld [vmem:[#allocation5 + $0x100] sm:$0xff] }
  0xa7   : > { %2442 = vmatprep.subr.bf16.mxu1 %v2441_v17  ;;  %v2317_v26 = vpack.c.bf16 %v428_v24, %v420_v23  ;;  %v430_v28 = vld [vmem:[#allocation5 + $0x158] sm:$0xff]  ;;  %v427_v31 = vld [vmem:[#allocation5 + $0x140] sm:$0xff]  ;;  %v421_v32 = vld [vmem:[#allocation5 + $0x110] sm:$0xff] }
  0xa8   : > { %v2445_v30 = vpack.c.bf16 %v430_v28, %v422_v27  ;;  %v429_v33 = vld [vmem:[#allocation5 + $0x150] sm:$0xff]  ;;  %v2319_v34 = vpack.c.bf16 %v427_v31, %v419_v29  ;;  %v436_v35 = vld [vmem:[#allocation5 + $0x188] sm:$0xff]  ;;  %v438_v37 = vld [vmem:[#allocation5 + $0x198] sm:$0xff] }
  0xa9   : > { %2316 = vmatpush1.bf16.msra.mxu0 %v2315_v21  ;;  %v444_v36 = vld [vmem:[#allocation5 + $0x1c8] sm:$0xff]  ;;  %v2447_v38 = vpack.c.bf16 %v429_v33, %v421_v32  ;;  %v446_v40 = vld [vmem:[#allocation5 + $0x1d8] sm:$0xff]  ;;  %v435_v41 = vld [vmem:[#allocation5 + $0x180] sm:$0xff] }
  0xaa   : > { %2444 = vmatpush1.bf16.msra.mxu1 %v2443_v25  ;;  %2318 = vmatprep.subr.bf16.mxu0 %v2317_v26  ;;  %v2321_v39 = vpack.c.bf16 %v444_v36, %v436_v35  ;;  %v443_v42 = vld [vmem:[#allocation5 + $0x1c0] sm:$0xff]  ;;  %v2449_v43 = vpack.c.bf16 %v446_v40, %v438_v37  ;;  %v437_v44 = vld [vmem:[#allocation5 + $0x190] sm:$0xff]  ;;  %v452_v46 = vld [vmem:[#allocation5 + $0x208] sm:$0xff] }
  0xab   : > { %2446 = vmatprep.subr.bf16.mxu1 %v2445_v30  ;;  %v445_v45 = vld [vmem:[#allocation5 + $0x1d0] sm:$0xff]  ;;  %v460_v47 = vld [vmem:[#allocation5 + $0x248] sm:$0xff]  ;;  %v454_v48 = vld [vmem:[#allocation5 + $0x218] sm:$0xff]  ;;  %v2323_v50 = vpack.c.bf16 %v443_v42, %v435_v41 }
  0xac   : > { %v462_v49 = vld [vmem:[#allocation5 + $0x258] sm:$0xff]  ;;  %v2451_v51 = vpack.c.bf16 %v445_v45, %v437_v44  ;;  %v2325_v52 = vpack.c.bf16 %v460_v47, %v452_v46  ;;  %v451_v53 = vld [vmem:[#allocation5 + $0x200] sm:$0xff]  ;;  %v453_v55 = vld [vmem:[#allocation5 + $0x210] sm:$0xff] }
  0xad   : > { %2320 = vmatpush1.bf16.msra.mxu0 %v2319_v34  ;;  %v459_v54 = vld [vmem:[#allocation5 + $0x240] sm:$0xff]  ;;  %v2453_v56 = vpack.c.bf16 %v462_v49, %v454_v48  ;;  %v461_v57 = vld [vmem:[#allocation5 + $0x250] sm:$0xff]  ;;  %v468_v58 = vld [vmem:[#allocation5 + $0x288] sm:$0xff] }
  0xae   : > { %2448 = vmatpush1.bf16.msra.mxu1 %v2447_v38  ;;  %2322 = vmatprep.subr.bf16.mxu0 %v2321_v39  ;;  %v476_v59 = vld [vmem:[#allocation5 + $0x2c8] sm:$0xff]  ;;  %v470_v60 = vld [vmem:[#allocation5 + $0x298] sm:$0xff]  ;;  %v2327_v62 = vpack.c.bf16 %v459_v54, %v451_v53  ;;  %v2455_v63 = vpack.c.bf16 %v461_v57, %v453_v55  ;;  %v467_v1 = vld [vmem:[#allocation5 + $0x280] sm:$0xff] }
  0xaf   : > { %2450 = vmatprep.subr.bf16.mxu1 %v2449_v43  ;;  %v478_v61 = vld [vmem:[#allocation5 + $0x2d8] sm:$0xff]  ;;  %v2329_v0 = vpack.c.bf16 %v476_v59, %v468_v58  ;;  %v475_v2 = vld [vmem:[#allocation5 + $0x2c0] sm:$0xff]  ;;  %v469_v3 = vld [vmem:[#allocation5 + $0x290] sm:$0xff] }
  0xb0   : > { %v2457_v4 = vpack.c.bf16 %v478_v61, %v470_v60  ;;  %v477_v5 = vld [vmem:[#allocation5 + $0x2d0] sm:$0xff]  ;;  %v484_v6 = vld [vmem:[#allocation5 + $0x308] sm:$0xff]  ;;  %v486_v8 = vld [vmem:[#allocation5 + $0x318] sm:$0xff]  ;;  %v2331_v10 = vpack.c.bf16 %v475_v2, %v467_v1 }
  0xb1   : > { %2324 = vmatpush1.bf16.msra.mxu0 %v2323_v50  ;;  %v492_v7 = vld [vmem:[#allocation5 + $0x348] sm:$0xff]  ;;  %v494_v9 = vld [vmem:[#allocation5 + $0x358] sm:$0xff]  ;;  %v2459_v11 = vpack.c.bf16 %v477_v5, %v469_v3  ;;  %v483_v13 = vld [vmem:[#allocation5 + $0x300] sm:$0xff] }
  0xb2   : > { %2452 = vmatpush1.bf16.msra.mxu1 %v2451_v51  ;;  %2326 = vmatprep.subr.bf16.mxu0 %v2325_v52  ;;  %v2333_v12 = vpack.c.bf16 %v492_v7, %v484_v6  ;;  %v491_v14 = vld [vmem:[#allocation5 + $0x340] sm:$0xff]  ;;  %v485_v15 = vld [vmem:[#allocation5 + $0x310] sm:$0xff]  ;;  %v2461_v16 = vpack.c.bf16 %v494_v9, %v486_v8  ;;  %v500_v18 = vld [vmem:[#allocation5 + $0x388] sm:$0xff] }
  0xb3   : > { %2454 = vmatprep.subr.bf16.mxu1 %v2453_v56  ;;  %v493_v17 = vld [vmem:[#allocation5 + $0x350] sm:$0xff]  ;;  %v508_v19 = vld [vmem:[#allocation5 + $0x3c8] sm:$0xff]  ;;  %v502_v20 = vld [vmem:[#allocation5 + $0x398] sm:$0xff]  ;;  %v2335_v22 = vpack.c.bf16 %v491_v14, %v483_v13 }
  0xb4   : > { %v510_v21 = vld [vmem:[#allocation5 + $0x3d8] sm:$0xff]  ;;  %v2463_v23 = vpack.c.bf16 %v493_v17, %v485_v15  ;;  %v2337_v24 = vpack.c.bf16 %v508_v19, %v500_v18  ;;  %v499_v25 = vld [vmem:[#allocation5 + $0x380] sm:$0xff]  ;;  %v501_v27 = vld [vmem:[#allocation5 + $0x390] sm:$0xff] }
  0xb5   : > { %2328 = vmatpush1.bf16.msra.mxu0 %v2327_v62  ;;  %v507_v26 = vld [vmem:[#allocation5 + $0x3c0] sm:$0xff]  ;;  %v2465_v28 = vpack.c.bf16 %v510_v21, %v502_v20  ;;  %v509_v29 = vld [vmem:[#allocation5 + $0x3d0] sm:$0xff]  ;;  %v516_v30 = vld [vmem:[#allocation5 + $0x408] sm:$0xff] }
  0xb6   : > { %2456 = vmatpush1.bf16.msra.mxu1 %v2455_v63  ;;  %2330 = vmatprep.subr.bf16.mxu0 %v2329_v0  ;;  %v524_v31 = vld [vmem:[#allocation5 + $0x448] sm:$0xff]  ;;  %v518_v32 = vld [vmem:[#allocation5 + $0x418] sm:$0xff]  ;;  %v2339_v34 = vpack.c.bf16 %v507_v26, %v499_v25  ;;  %v2467_v35 = vpack.c.bf16 %v509_v29, %v501_v27  ;;  %v515_v37 = vld [vmem:[#allocation5 + $0x400] sm:$0xff] }
  0xb7   : > { %2458 = vmatprep.subr.bf16.mxu1 %v2457_v4  ;;  %v526_v33 = vld [vmem:[#allocation5 + $0x458] sm:$0xff]  ;;  %v2341_v36 = vpack.c.bf16 %v524_v31, %v516_v30  ;;  %v523_v38 = vld [vmem:[#allocation5 + $0x440] sm:$0xff]  ;;  %v517_v39 = vld [vmem:[#allocation5 + $0x410] sm:$0xff] }
  0xb8   : > { %v2469_v40 = vpack.c.bf16 %v526_v33, %v518_v32  ;;  %v525_v41 = vld [vmem:[#allocation5 + $0x450] sm:$0xff]  ;;  %v532_v42 = vld [vmem:[#allocation5 + $0x488] sm:$0xff]  ;;  %v534_v44 = vld [vmem:[#allocation5 + $0x498] sm:$0xff]  ;;  %v2343_v46 = vpack.c.bf16 %v523_v38, %v515_v37 }
  0xb9   : > { %2332 = vmatpush1.bf16.msra.mxu0 %v2331_v10  ;;  %v540_v43 = vld [vmem:[#allocation5 + $0x4c8] sm:$0xff]  ;;  %v542_v45 = vld [vmem:[#allocation5 + $0x4d8] sm:$0xff]  ;;  %v2471_v47 = vpack.c.bf16 %v525_v41, %v517_v39  ;;  %v531_v49 = vld [vmem:[#allocation5 + $0x480] sm:$0xff] }
  0xba   : > { %2460 = vmatpush1.bf16.msra.mxu1 %v2459_v11  ;;  %2334 = vmatprep.subr.bf16.mxu0 %v2333_v12  ;;  %v2345_v48 = vpack.c.bf16 %v540_v43, %v532_v42  ;;  %v539_v50 = vld [vmem:[#allocation5 + $0x4c0] sm:$0xff]  ;;  %v533_v51 = vld [vmem:[#allocation5 + $0x490] sm:$0xff]  ;;  %v2473_v52 = vpack.c.bf16 %v542_v45, %v534_v44  ;;  %v548_v54 = vld [vmem:[#allocation5 + $0x508] sm:$0xff] }
  0xbb   : > { %2462 = vmatprep.subr.bf16.mxu1 %v2461_v16  ;;  %v541_v53 = vld [vmem:[#allocation5 + $0x4d0] sm:$0xff]  ;;  %v556_v55 = vld [vmem:[#allocation5 + $0x548] sm:$0xff]  ;;  %v550_v56 = vld [vmem:[#allocation5 + $0x518] sm:$0xff]  ;;  %v2347_v58 = vpack.c.bf16 %v539_v50, %v531_v49 }
  0xbc   : > { %v558_v57 = vld [vmem:[#allocation5 + $0x558] sm:$0xff]  ;;  %v2475_v59 = vpack.c.bf16 %v541_v53, %v533_v51  ;;  %v2349_v60 = vpack.c.bf16 %v556_v55, %v548_v54  ;;  %v547_v61 = vld [vmem:[#allocation5 + $0x500] sm:$0xff]  ;;  %v549_v63 = vld [vmem:[#allocation5 + $0x510] sm:$0xff] }
  0xbd   : > { %2336 = vmatpush1.bf16.msra.mxu0 %v2335_v22  ;;  %v555_v62 = vld [vmem:[#allocation5 + $0x540] sm:$0xff]  ;;  %v2477_v0 = vpack.c.bf16 %v558_v57, %v550_v56  ;;  %v557_v1 = vld [vmem:[#allocation5 + $0x550] sm:$0xff]  ;;  %v564_v2 = vld [vmem:[#allocation5 + $0x588] sm:$0xff] }
  0xbe   : > { %2464 = vmatpush1.bf16.msra.mxu1 %v2463_v23  ;;  %2338 = vmatprep.subr.bf16.mxu0 %v2337_v24  ;;  %v572_v3 = vld [vmem:[#allocation5 + $0x5c8] sm:$0xff]  ;;  %v566_v4 = vld [vmem:[#allocation5 + $0x598] sm:$0xff]  ;;  %v2351_v6 = vpack.c.bf16 %v555_v62, %v547_v61  ;;  %v563_v7 = vld [vmem:[#allocation5 + $0x580] sm:$0xff]  ;;  %v2479_v8 = vpack.c.bf16 %v557_v1, %v549_v63 }
  0xbf   : > { %2466 = vmatprep.subr.bf16.mxu1 %v2465_v28  ;;  %v574_v5 = vld [vmem:[#allocation5 + $0x5d8] sm:$0xff]  ;;  %v2353_v9 = vpack.c.bf16 %v572_v3, %v564_v2  ;;  %v571_v10 = vld [vmem:[#allocation5 + $0x5c0] sm:$0xff]  ;;  %v565_v11 = vld [vmem:[#allocation5 + $0x590] sm:$0xff] }
  0xc0   : > { %v573_v12 = vld [vmem:[#allocation5 + $0x5d0] sm:$0xff]  ;;  %v2481_v13 = vpack.c.bf16 %v574_v5, %v566_v4  ;;  %v580_v14 = vld [vmem:[#allocation5 + $0x608] sm:$0xff]  ;;  %v582_v17 = vld [vmem:[#allocation5 + $0x618] sm:$0xff]  ;;  %v2355_v19 = vpack.c.bf16 %v571_v10, %v563_v7 }
  0xc1   : > { %2340 = vmatpush1.bf16.msra.mxu0 %v2339_v34  ;;  %v588_v15 = vld [vmem:[#allocation5 + $0x648] sm:$0xff]  ;;  %v590_v18 = vld [vmem:[#allocation5 + $0x658] sm:$0xff]  ;;  %v2483_v20 = vpack.c.bf16 %v573_v12, %v565_v11  ;;  %v579_v22 = vld [vmem:[#allocation5 + $0x600] sm:$0xff] }
  0xc2   : > { %2468 = vmatpush1.bf16.msra.mxu1 %v2467_v35  ;;  %2342 = vmatprep.subr.bf16.mxu0 %v2341_v36  ;;  %v3601_v16 = vld [vmem:[%s3586_s25 + $0x8] sm:$0xff]  ;;  %v2357_v21 = vpack.c.bf16 %v588_v15, %v580_v14  ;;  %v587_v23 = vld [vmem:[#allocation5 + $0x640] sm:$0xff]  ;;  %v581_v24 = vld [vmem:[#allocation5 + $0x610] sm:$0xff]  ;;  %v2485_v25 = vpack.c.bf16 %v590_v18, %v582_v17 }
  0xc3   : > { %2470 = vmatprep.subr.bf16.mxu1 %v2469_v40  ;;  %1005 = vmatprep.mubr.f32.mxu0 %v3601_v16  ;;  %v589_v26 = vld [vmem:[#allocation5 + $0x650] sm:$0xff]  ;;  %v596_v27 = vld [vmem:[#allocation5 + $0x688] sm:$0xff]  ;;  %v598_v29 = vld [vmem:[#allocation5 + $0x698] sm:$0xff]  ;;  %v2359_v31 = vpack.c.bf16 %v587_v23, %v579_v22 }
  0xc4   : > { %1147 = vmatprep.mubr.f32.mxu1 %v3601_v16  ;;  %v604_v28 = vld [vmem:[#allocation5 + $0x6c8] sm:$0xff]  ;;  %v606_v30 = vld [vmem:[#allocation5 + $0x6d8] sm:$0xff]  ;;  %v2487_v32 = vpack.c.bf16 %v589_v26, %v581_v24  ;;  %v595_v34 = vld [vmem:[#allocation5 + $0x680] sm:$0xff] }
  0xc5   : > { %2344 = vmatpush1.bf16.msra.mxu0 %v2343_v46  ;;  %v2361_v33 = vpack.c.bf16 %v604_v28, %v596_v27  ;;  %v603_v35 = vld [vmem:[#allocation5 + $0x6c0] sm:$0xff]  ;;  %v597_v36 = vld [vmem:[#allocation5 + $0x690] sm:$0xff]  ;;  %v2489_v37 = vpack.c.bf16 %v606_v30, %v598_v29  ;;  %v612_v39 = vld [vmem:[#allocation5 + $0x708] sm:$0xff] }
  0xc6   : > { %2472 = vmatpush1.bf16.msra.mxu1 %v2471_v47  ;;  %2346 = vmatprep.subr.bf16.mxu0 %v2345_v48  ;;  %v605_v38 = vld [vmem:[#allocation5 + $0x6d0] sm:$0xff]  ;;  %v620_v40 = vld [vmem:[#allocation5 + $0x748] sm:$0xff]  ;;  %v614_v41 = vld [vmem:[#allocation5 + $0x718] sm:$0xff]  ;;  %v2363_v43 = vpack.c.bf16 %v603_v35, %v595_v34 }
  0xc7   : > { %2474 = vmatprep.subr.bf16.mxu1 %v2473_v52  ;;  %v622_v42 = vld [vmem:[#allocation5 + $0x758] sm:$0xff]  ;;  %v2491_v44 = vpack.c.bf16 %v605_v38, %v597_v36  ;;  %v2365_v45 = vpack.c.bf16 %v620_v40, %v612_v39  ;;  %v611_v46 = vld [vmem:[#allocation5 + $0x700] sm:$0xff]  ;;  %v613_v48 = vld [vmem:[#allocation5 + $0x710] sm:$0xff] }
  0xc8   : > { %v619_v47 = vld [vmem:[#allocation5 + $0x740] sm:$0xff]  ;;  %v2493_v49 = vpack.c.bf16 %v622_v42, %v614_v41  ;;  %v621_v50 = vld [vmem:[#allocation5 + $0x750] sm:$0xff]  ;;  %v628_v51 = vld [vmem:[#allocation5 + $0x788] sm:$0xff] }
  0xc9   : > { %2348 = vmatpush1.bf16.msra.mxu0 %v2347_v58  ;;  %v636_v52 = vld [vmem:[#allocation5 + $0x7c8] sm:$0xff]  ;;  %v630_v53 = vld [vmem:[#allocation5 + $0x798] sm:$0xff]  ;;  %v2367_v55 = vpack.c.bf16 %v619_v47, %v611_v46  ;;  %v2495_v56 = vpack.c.bf16 %v621_v50, %v613_v48  ;;  %v627_v58 = vld [vmem:[#allocation5 + $0x780] sm:$0xff] }
  0xca   : > { %2476 = vmatpush1.bf16.msra.mxu1 %v2475_v59  ;;  %2350 = vmatprep.subr.bf16.mxu0 %v2349_v60  ;;  %v638_v54 = vld [vmem:[#allocation5 + $0x7d8] sm:$0xff]  ;;  %v2369_v57 = vpack.c.bf16 %v636_v52, %v628_v51  ;;  %v635_v59 = vld [vmem:[#allocation5 + $0x7c0] sm:$0xff]  ;;  %v629_v60 = vld [vmem:[#allocation5 + $0x790] sm:$0xff] }
  0xcb   : > { %2478 = vmatprep.subr.bf16.mxu1 %v2477_v0  ;;  %v2497_v61 = vpack.c.bf16 %v638_v54, %v630_v53  ;;  %v637_v62 = vld [vmem:[#allocation5 + $0x7d0] sm:$0xff]  ;;  %v644_v63 = vld [vmem:[#allocation5 + $0x808] sm:$0xff]  ;;  %v646_v1 = vld [vmem:[#allocation5 + $0x818] sm:$0xff]  ;;  %v2371_v3 = vpack.c.bf16 %v635_v59, %v627_v58 }
  0xcc   : > { %v652_v0 = vld [vmem:[#allocation5 + $0x848] sm:$0xff]  ;;  %v654_v2 = vld [vmem:[#allocation5 + $0x858] sm:$0xff]  ;;  %v2499_v4 = vpack.c.bf16 %v637_v62, %v629_v60  ;;  %v651_v7 = vld [vmem:[#allocation5 + $0x840] sm:$0xff] }
  0xcd   : > { %2352 = vmatpush1.bf16.msra.mxu0 %v2351_v6  ;;  %v2373_v5 = vpack.c.bf16 %v652_v0, %v644_v63  ;;  %v643_v6 = vld [vmem:[#allocation5 + $0x800] sm:$0xff]  ;;  %v653_v10 = vld [vmem:[#allocation5 + $0x850] sm:$0xff]  ;;  %v660_v11 = vld [vmem:[#allocation5 + $0x888] sm:$0xff] }
  0xce   : > { %2480 = vmatpush1.bf16.msra.mxu1 %v2479_v8  ;;  %2354 = vmatprep.subr.bf16.mxu0 %v2353_v9  ;;  %v645_v8 = vld [vmem:[#allocation5 + $0x810] sm:$0xff]  ;;  %v2501_v9 = vpack.c.bf16 %v654_v2, %v646_v1  ;;  %v668_v12 = vld [vmem:[#allocation5 + $0x8c8] sm:$0xff]  ;;  %v670_v14 = vld [vmem:[#allocation5 + $0x8d8] sm:$0xff]  ;;  %v2375_v17 = vpack.c.bf16 %v651_v7, %v643_v6 }
  0xcf   : > { %2482 = vmatprep.subr.bf16.mxu1 %v2481_v13  ;;  %v662_v13 = vld [vmem:[#allocation5 + $0x898] sm:$0xff]  ;;  %v383_v15 = vld [vmem:[%s3586_s25] sm:$0xff]  ;;  %v2503_v18 = vpack.c.bf16 %v653_v10, %v645_v8  ;;  %v661_v22 = vld [vmem:[#allocation5 + $0x890] sm:$0xff] }
  0xd0   : > { %v2505_v23 = vpack.c.bf16 %v670_v14, %v662_v13  ;;  %v669_v24 = vld [vmem:[#allocation5 + $0x8d0] sm:$0xff]  ;;  %v684_v26 = vld [vmem:[#allocation5 + $0x948] sm:$0xff]  ;;  %v678_v27 = vld [vmem:[#allocation5 + $0x918] sm:$0xff] }
  0xd1   : > { %2356 = vmatpush1.bf16.msra.mxu0 %v2355_v19  ;;  %v2377_v19 = vpack.c.bf16 %v668_v12, %v660_v11  ;;  %v686_v28 = vld [vmem:[#allocation5 + $0x958] sm:$0xff]  ;;  %v2507_v30 = vpack.c.bf16 %v669_v24, %v661_v22  ;;  %v677_v34 = vld [vmem:[#allocation5 + $0x910] sm:$0xff]  ;;  %v700_v38 = vld [vmem:[#allocation5 + $0x9c8] sm:$0xff] }
  0xd2   : > { %2484 = vmatpush1.bf16.msra.mxu1 %v2483_v20  ;;  %2358 = vmatprep.subr.bf16.mxu0 %v2357_v21  ;;  %v659_v20 = vld [vmem:[#allocation5 + $0x880] sm:$0xff]  ;;  %v2509_v35 = vpack.c.bf16 %v686_v28, %v678_v27  ;;  %v685_v36 = vld [vmem:[#allocation5 + $0x950] sm:$0xff]  ;;  %v694_v39 = vld [vmem:[#allocation5 + $0x998] sm:$0xff] }
  0xd3   : > { %2486 = vmatprep.subr.bf16.mxu1 %v2485_v25  ;;  %v667_v21 = vld [vmem:[#allocation5 + $0x8c0] sm:$0xff]  ;;  %v676_v25 = vld [vmem:[#allocation5 + $0x908] sm:$0xff]  ;;  %v702_v40 = vld [vmem:[#allocation5 + $0x9d8] sm:$0xff]  ;;  %v2511_v42 = vpack.c.bf16 %v685_v36, %v677_v34 }
  0xd4   : > { %v2379_v29 = vpack.c.bf16 %v667_v21, %v659_v20  ;;  %v693_v46 = vld [vmem:[#allocation5 + $0x990] sm:$0xff]  ;;  %v2513_v47 = vpack.c.bf16 %v702_v40, %v694_v39  ;;  %v716_v50 = vld [vmem:[#allocation5 + $0xa48] sm:$0xff]  ;;  %v710_v51 = vld [vmem:[#allocation5 + $0xa18] sm:$0xff] }
  0xd5   : > { %2360 = vmatpush1.bf16.msra.mxu0 %v2359_v31  ;;  %v2381_v31 = vpack.c.bf16 %v684_v26, %v676_v25  ;;  %v701_v48 = vld [vmem:[#allocation5 + $0x9d0] sm:$0xff]  ;;  %v718_v52 = vld [vmem:[#allocation5 + $0xa58] sm:$0xff]  ;;  %v732_v62 = vld [vmem:[#allocation5 + $0xac8] sm:$0xff] }
  0xd6   : > { %2488 = vmatpush1.bf16.msra.mxu1 %v2487_v32  ;;  %2362 = vmatprep.subr.bf16.mxu0 %v2361_v33  ;;  %v675_v32 = vld [vmem:[#allocation5 + $0x900] sm:$0xff]  ;;  %v2515_v54 = vpack.c.bf16 %v701_v48, %v693_v46  ;;  %v709_v58 = vld [vmem:[#allocation5 + $0xa10] sm:$0xff]  ;;  %v2517_v59 = vpack.c.bf16 %v718_v52, %v710_v51  ;;  %v726_v63 = vld [vmem:[#allocation5 + $0xa98] sm:$0xff] }
  0xd7   : > { %2490 = vmatprep.subr.bf16.mxu1 %v2489_v37  ;;  %v683_v33 = vld [vmem:[#allocation5 + $0x940] sm:$0xff]  ;;  %v692_v37 = vld [vmem:[#allocation5 + $0x988] sm:$0xff]  ;;  %v717_v60 = vld [vmem:[#allocation5 + $0xa50] sm:$0xff] }
  0xd8   : > { %v2383_v41 = vpack.c.bf16 %v683_v33, %v675_v32  ;;  %v734_v0 = vld [vmem:[#allocation5 + $0xad8] sm:$0xff]  ;;  %v2519_v2 = vpack.c.bf16 %v717_v60, %v709_v58  ;;  %v725_v6 = vld [vmem:[#allocation5 + $0xa90] sm:$0xff]  ;;  %v748_v10 = vld [vmem:[#allocation5 + $0xb48] sm:$0xff] }
  0xd9   : > { %2364 = vmatpush1.bf16.msra.mxu0 %v2363_v43  ;;  %v2385_v43 = vpack.c.bf16 %v700_v38, %v692_v37  ;;  %v2521_v7 = vpack.c.bf16 %v734_v0, %v726_v63  ;;  %v733_v8 = vld [vmem:[#allocation5 + $0xad0] sm:$0xff]  ;;  %v742_v11 = vld [vmem:[#allocation5 + $0xb18] sm:$0xff]  ;;  %v739_v14 = vld [vmem:[#allocation5 + $0xb00] sm:$0xff] }
  0xda   : > { %2492 = vmatpush1.bf16.msra.mxu1 %v2491_v44  ;;  %2366 = vmatprep.subr.bf16.mxu0 %v2365_v45  ;;  %v691_v44 = vld [vmem:[#allocation5 + $0x980] sm:$0xff]  ;;  %v750_v12 = vld [vmem:[#allocation5 + $0xb58] sm:$0xff]  ;;  %v749_v20 = vld [vmem:[#allocation5 + $0xb50] sm:$0xff] }
  0xdb   : > { %2494 = vmatprep.subr.bf16.mxu1 %v2493_v49  ;;  %v699_v45 = vld [vmem:[#allocation5 + $0x9c0] sm:$0xff]  ;;  %v708_v49 = vld [vmem:[#allocation5 + $0xa08] sm:$0xff]  ;;  %v2525_v21 = vpack.c.bf16 %v750_v12, %v742_v11  ;;  %v3607_v24 = vld [vmem:[%s3586_s25 + $0x18] sm:$0xff] }
  0xdc   : > { %v2387_v53 = vpack.c.bf16 %v699_v45, %v691_v44  ;;  %v756_v22 = vld [vmem:[#allocation5 + $0xb88] sm:$0xff]  ;;  %v758_v25 = vld [vmem:[#allocation5 + $0xb98] sm:$0xff]  ;;  %v757_v32 = vld [vmem:[#allocation5 + $0xb90] sm:$0xff] }
  0xdd   : > { %2368 = vmatpush1.bf16.msra.mxu0 %v2367_v55  ;;  %v2389_v55 = vpack.c.bf16 %v716_v50, %v708_v49  ;;  %v766_v26 = vld [vmem:[#allocation5 + $0xbd8] sm:$0xff]  ;;  %v765_v34 = vld [vmem:[#allocation5 + $0xbd0] sm:$0xff]  ;;  %v780_v36 = vld [vmem:[#allocation5 + $0xc48] sm:$0xff] }
  0xde   : > { %2496 = vmatpush1.bf16.msra.mxu1 %v2495_v56  ;;  %2370 = vmatprep.subr.bf16.mxu0 %v2369_v57  ;;  %v707_v56 = vld [vmem:[#allocation5 + $0xa00] sm:$0xff]  ;;  %v2529_v33 = vpack.c.bf16 %v766_v26, %v758_v25  ;;  %v774_v37 = vld [vmem:[#allocation5 + $0xc18] sm:$0xff]  ;;  %v2531_v40 = vpack.c.bf16 %v765_v34, %v757_v32  ;;  %v773_v44 = vld [vmem:[#allocation5 + $0xc10] sm:$0xff] }
  0xdf   : > { %2498 = vmatprep.subr.bf16.mxu1 %v2497_v61  ;;  %v715_v57 = vld [vmem:[#allocation5 + $0xa40] sm:$0xff]  ;;  %v724_v61 = vld [vmem:[#allocation5 + $0xa88] sm:$0xff]  ;;  %v782_v38 = vld [vmem:[#allocation5 + $0xc58] sm:$0xff] }
  0xe0   : > { %v2391_v1 = vpack.c.bf16 %v715_v57, %v707_v56  ;;  %v2533_v45 = vpack.c.bf16 %v782_v38, %v774_v37  ;;  %v781_v46 = vld [vmem:[#allocation5 + $0xc50] sm:$0xff]  ;;  %v796_v48 = vld [vmem:[#allocation5 + $0xcc8] sm:$0xff]  ;;  %v790_v49 = vld [vmem:[#allocation5 + $0xc98] sm:$0xff] }
  0xe1   : > { %2372 = vmatpush1.bf16.msra.mxu0 %v2371_v3  ;;  %v2393_v3 = vpack.c.bf16 %v732_v62, %v724_v61  ;;  %v798_v50 = vld [vmem:[#allocation5 + $0xcd8] sm:$0xff]  ;;  %v2535_v52 = vpack.c.bf16 %v781_v46, %v773_v44  ;;  %v789_v56 = vld [vmem:[#allocation5 + $0xc90] sm:$0xff]  ;;  %v812_v60 = vld [vmem:[#allocation5 + $0xd48] sm:$0xff] }
  0xe2   : > { %2500 = vmatpush1.bf16.msra.mxu1 %v2499_v4  ;;  %2374 = vmatprep.subr.bf16.mxu0 %v2373_v5  ;;  %v723_v4 = vld [vmem:[#allocation5 + $0xa80] sm:$0xff]  ;;  %v2537_v57 = vpack.c.bf16 %v798_v50, %v790_v49  ;;  %v797_v58 = vld [vmem:[#allocation5 + $0xcd0] sm:$0xff]  ;;  %v806_v61 = vld [vmem:[#allocation5 + $0xd18] sm:$0xff] }
  0xe3   : > { %2502 = vmatprep.subr.bf16.mxu1 %v2501_v9  ;;  %v731_v5 = vld [vmem:[#allocation5 + $0xac0] sm:$0xff]  ;;  %v740_v9 = vld [vmem:[#allocation5 + $0xb08] sm:$0xff]  ;;  %v814_v62 = vld [vmem:[#allocation5 + $0xd58] sm:$0xff]  ;;  %v2539_v0 = vpack.c.bf16 %v797_v58, %v789_v56 }
  0xe4   : > { %1006 = vmatmul.mubr.f32.vlgmr.msra.gmra.mrb[0].mxu0 %v383_v15  ;;  %v2395_v13 = vpack.c.bf16 %v731_v5, %v723_v4  ;;  %v805_v4 = vld [vmem:[#allocation5 + $0xd10] sm:$0xff]  ;;  %v2541_v5 = vpack.c.bf16 %v814_v62, %v806_v61  ;;  %v860_v34 = vld [vmem:[#allocation5 + $0xec8] sm:$0xff] }
  0xe5   : > { %2376 = vmatpush1.bf16.msra.mxu0 %v2375_v17  ;;  %1148 = vmatmul.mubr.f32.vlgmr.msra.gmra.mrb[0].mxu1 %v383_v15  ;;  %v2523_v15 = vpack.c.bf16 %v733_v8, %v725_v6  ;;  %v2397_v17 = vpack.c.bf16 %v748_v10, %v740_v9  ;;  %v813_v6 = vld [vmem:[#allocation5 + $0xd50] sm:$0xff]  ;;  %v828_v8 = vld [vmem:[#allocation5 + $0xdc8] sm:$0xff]  ;;  %v822_v9 = vld [vmem:[#allocation5 + $0xd98] sm:$0xff] }
  0xe6   : > { %2504 = vmatpush1.bf16.msra.mxu1 %v2503_v18  ;;  %2378 = vmatprep.subr.bf16.mxu0 %v2377_v19  ;;  %v747_v18 = vld [vmem:[#allocation5 + $0xb40] sm:$0xff]  ;;  %v741_v19 = vld [vmem:[#allocation5 + $0xb10] sm:$0xff]  ;;  %v830_v10 = vld [vmem:[#allocation5 + $0xdd8] sm:$0xff]  ;;  %v2543_v12 = vpack.c.bf16 %v813_v6, %v805_v4 }
  0xe7   : > { %2506 = vmatprep.subr.bf16.mxu1 %v2505_v23  ;;  %v764_v23 = vld [vmem:[#allocation5 + $0xbc8] sm:$0xff]  ;;  %1076 = vmatprep.mubr.f32.mxu0 %v3607_v24  ;;  %v2399_v27 = vpack.c.bf16 %v747_v18, %v739_v14  ;;  %v2527_v28 = vpack.c.bf16 %v749_v20, %v741_v19  ;;  %v819_v14 = vld [vmem:[#allocation5 + $0xd80] sm:$0xff]  ;;  %v2545_v18 = vpack.c.bf16 %v830_v10, %v822_v9  ;;  %v829_v19 = vld [vmem:[#allocation5 + $0xdd0] sm:$0xff] }
  0xe8   : > { %1218 = vmatprep.mubr.f32.mxu1 %v3607_v24  ;;  %v836_v20 = vld [vmem:[#allocation5 + $0xe08] sm:$0xff]  ;;  %v845_v32 = vld [vmem:[#allocation5 + $0xe50] sm:$0xff] }
  0xe9   : > { %2380 = vmatpush1.bf16.msra.mxu0 %v2379_v29  ;;  %v2401_v29 = vpack.c.bf16 %v764_v23, %v756_v22  ;;  %v838_v22 = vld [vmem:[#allocation5 + $0xe18] sm:$0xff]  ;;  %v861_v44 = vld [vmem:[#allocation5 + $0xed0] sm:$0xff]  ;;  %v876_v46 = vld [vmem:[#allocation5 + $0xf48] sm:$0xff] }
  0xea   : > { %2508 = vmatpush1.bf16.msra.mxu1 %v2507_v30  ;;  %2382 = vmatprep.subr.bf16.mxu0 %v2381_v31  ;;  %v755_v30 = vld [vmem:[#allocation5 + $0xb80] sm:$0xff]  ;;  %v846_v23 = vld [vmem:[#allocation5 + $0xe58] sm:$0xff]  ;;  %v877_v56 = vld [vmem:[#allocation5 + $0xf50] sm:$0xff] }
  0xeb   : > { %2510 = vmatprep.subr.bf16.mxu1 %v2509_v35  ;;  %v763_v31 = vld [vmem:[#allocation5 + $0xbc0] sm:$0xff]  ;;  %v772_v35 = vld [vmem:[#allocation5 + $0xc08] sm:$0xff]  ;;  %v893_v4 = vld [vmem:[#allocation5 + $0xfd0] sm:$0xff] }
  0xec   : > { %v2403_v39 = vpack.c.bf16 %v763_v31, %v755_v30  ;;  %v837_v30 = vld [vmem:[#allocation5 + $0xe10] sm:$0xff]  ;;  %v2549_v31 = vpack.c.bf16 %v846_v23, %v838_v22  ;;  %v892_v58 = vld [vmem:[#allocation5 + $0xfc8] sm:$0xff] }
  0xed   : > { %2384 = vmatpush1.bf16.msra.mxu0 %v2383_v41  ;;  %v2405_v41 = vpack.c.bf16 %v780_v36, %v772_v35  ;;  %v854_v35 = vld [vmem:[#allocation5 + $0xe98] sm:$0xff]  ;;  %v2551_v38 = vpack.c.bf16 %v845_v32, %v837_v30  ;;  %v400_v6 = vld [vmem:[#allocation5 + $0x68] sm:$0xff]  ;;  %v385_v22 = vld [vmem:[%s3586_s25 + $0x10] sm:$0xff] }
  0xee   : > { %2512 = vmatpush1.bf16.msra.mxu1 %v2511_v42  ;;  %2386 = vmatprep.subr.bf16.mxu0 %v2385_v43  ;;  %v771_v42 = vld [vmem:[#allocation5 + $0xc00] sm:$0xff]  ;;  %v862_v36 = vld [vmem:[#allocation5 + $0xed8] sm:$0xff]  ;;  %v424_v32 = vld [vmem:[#allocation5 + $0x128] sm:$0xff] }
  0xef   : > { %2514 = vmatprep.subr.bf16.mxu1 %v2513_v47  ;;  %v779_v43 = vld [vmem:[#allocation5 + $0xc40] sm:$0xff]  ;;  %v788_v47 = vld [vmem:[#allocation5 + $0xc88] sm:$0xff] }
  0xf0   : > { %v2407_v51 = vpack.c.bf16 %v779_v43, %v771_v42  ;;  %v853_v42 = vld [vmem:[#allocation5 + $0xe90] sm:$0xff]  ;;  %v2553_v43 = vpack.c.bf16 %v862_v36, %v854_v35  ;;  %v434_v35 = vld [vmem:[#allocation5 + $0x178] sm:$0xff] }
  0xf1   : > { %2388 = vmatpush1.bf16.msra.mxu0 %v2387_v53  ;;  %v2409_v53 = vpack.c.bf16 %v796_v48, %v788_v47  ;;  %v870_v47 = vld [vmem:[#allocation5 + $0xf18] sm:$0xff]  ;;  %v2555_v50 = vpack.c.bf16 %v861_v44, %v853_v42  ;;  %v440_v44 = vld [vmem:[#allocation5 + $0x1a8] sm:$0xff] }
  0xf2   : > { %2516 = vmatpush1.bf16.msra.mxu1 %v2515_v54  ;;  %2390 = vmatprep.subr.bf16.mxu0 %v2389_v55  ;;  %v787_v54 = vld [vmem:[#allocation5 + $0xc80] sm:$0xff]  ;;  %v878_v48 = vld [vmem:[#allocation5 + $0xf58] sm:$0xff] }
  0xf3   : > { %2518 = vmatprep.subr.bf16.mxu1 %v2517_v59  ;;  %v795_v55 = vld [vmem:[#allocation5 + $0xcc0] sm:$0xff]  ;;  %v804_v59 = vld [vmem:[#allocation5 + $0xd08] sm:$0xff] }
  0xf4   : > { %v2411_v63 = vpack.c.bf16 %v795_v55, %v787_v54  ;;  %v869_v54 = vld [vmem:[#allocation5 + $0xf10] sm:$0xff]  ;;  %v2557_v55 = vpack.c.bf16 %v878_v48, %v870_v47  ;;  %v450_v47 = vld [vmem:[#allocation5 + $0x1f8] sm:$0xff] }
  0xf5   : > { %2392 = vmatpush1.bf16.msra.mxu0 %v2391_v1  ;;  %v2413_v1 = vpack.c.bf16 %v812_v60, %v804_v59  ;;  %v886_v59 = vld [vmem:[#allocation5 + $0xf98] sm:$0xff]  ;;  %v2559_v62 = vpack.c.bf16 %v877_v56, %v869_v54  ;;  %v456_v56 = vld [vmem:[#allocation5 + $0x228] sm:$0xff] }
  0xf6   : > { %2520 = vmatpush1.bf16.msra.mxu1 %v2519_v2  ;;  %2394 = vmatprep.subr.bf16.mxu0 %v2393_v3  ;;  %v803_v2 = vld [vmem:[#allocation5 + $0xd00] sm:$0xff]  ;;  %v894_v60 = vld [vmem:[#allocation5 + $0xfd8] sm:$0xff] }
  0xf7   : > { %2522 = vmatprep.subr.bf16.mxu1 %v2521_v7  ;;  %v811_v3 = vld [vmem:[#allocation5 + $0xd40] sm:$0xff]  ;;  %v820_v7 = vld [vmem:[#allocation5 + $0xd88] sm:$0xff] }
  0xf8   : > { %v2415_v11 = vpack.c.bf16 %v811_v3, %v803_v2  ;;  %v885_v2 = vld [vmem:[#allocation5 + $0xf90] sm:$0xff]  ;;  %v2561_v3 = vpack.c.bf16 %v894_v60, %v886_v59  ;;  %v466_v59 = vld [vmem:[#allocation5 + $0x278] sm:$0xff] }
  0xf9   : > { %2396 = vmatpush1.bf16.msra.mxu0 %v2395_v13  ;;  %v2417_v13 = vpack.c.bf16 %v828_v8, %v820_v7  ;;  %v394_v7 = vld [vmem:[#allocation5 + $0x38] sm:$0xff]  ;;  %v2563_v10 = vpack.c.bf16 %v893_v4, %v885_v2  ;;  %v465_v2 = vld [vmem:[#allocation5 + $0x270] sm:$0xff]  ;;  %v480_v4 = vld [vmem:[#allocation5 + $0x2e8] sm:$0xff] }
  0xfa   : > { %2524 = vmatpush1.bf16.msra.mxu1 %v2523_v15  ;;  %2398 = vmatprep.subr.bf16.mxu0 %v2397_v17  ;;  %v827_v15 = vld [vmem:[#allocation5 + $0xdc0] sm:$0xff]  ;;  %v821_v17 = vld [vmem:[#allocation5 + $0xd90] sm:$0xff]  ;;  %v402_v8 = vld [vmem:[#allocation5 + $0x78] sm:$0xff] }
  0xfb   : > { %2526 = vmatprep.subr.bf16.mxu1 %v2525_v21  ;;  %v844_v21 = vld [vmem:[#allocation5 + $0xe48] sm:$0xff]  ;;  %v2419_v25 = vpack.c.bf16 %v827_v15, %v819_v14  ;;  %v2547_v26 = vpack.c.bf16 %v829_v19, %v821_v17  ;;  %v393_v14 = vld [vmem:[#allocation5 + $0x30] sm:$0xff]  ;;  %v2693_v15 = vpack.c.bf16 %v402_v8, %v394_v7 }
  0xfc   : > { %v401_v17 = vld [vmem:[#allocation5 + $0x70] sm:$0xff]  ;;  %v416_v19 = vld [vmem:[#allocation5 + $0xe8] sm:$0xff] }
  0xfd   : > { %2400 = vmatpush1.bf16.msra.mxu0 %v2399_v27  ;;  %v2421_v27 = vpack.c.bf16 %v844_v21, %v836_v20  ;;  %v410_v20 = vld [vmem:[#allocation5 + $0xb8] sm:$0xff] }
  0xfe   : > { %2528 = vmatpush1.bf16.msra.mxu1 %v2527_v28  ;;  %2402 = vmatprep.subr.bf16.mxu0 %v2401_v29  ;;  %v835_v28 = vld [vmem:[#allocation5 + $0xe00] sm:$0xff]  ;;  %v418_v21 = vld [vmem:[#allocation5 + $0xf8] sm:$0xff] }
  0xff   : > { %2530 = vmatprep.subr.bf16.mxu1 %v2529_v33  ;;  %v843_v29 = vld [vmem:[#allocation5 + $0xe40] sm:$0xff]  ;;  %v852_v33 = vld [vmem:[#allocation5 + $0xe88] sm:$0xff]  ;;  %v2697_v30 = vpack.c.bf16 %v418_v21, %v410_v20 }
 0x100   : > { %v2423_v37 = vpack.c.bf16 %v843_v29, %v835_v28  ;;  %v415_v28 = vld [vmem:[#allocation5 + $0xe0] sm:$0xff]  ;;  %v409_v29 = vld [vmem:[#allocation5 + $0xb0] sm:$0xff] }
 0x101   : > { %2404 = vmatpush1.bf16.msra.mxu0 %v2403_v39  ;;  %v2425_v39 = vpack.c.bf16 %v860_v34, %v852_v33  ;;  %v432_v33 = vld [vmem:[#allocation5 + $0x168] sm:$0xff]  ;;  %v426_v34 = vld [vmem:[#allocation5 + $0x138] sm:$0xff] }
 0x102   : > { %2532 = vmatpush1.bf16.msra.mxu1 %v2531_v40  ;;  %2406 = vmatprep.subr.bf16.mxu0 %v2405_v41  ;;  %v851_v40 = vld [vmem:[#allocation5 + $0xe80] sm:$0xff]  ;;  %v2701_v42 = vpack.c.bf16 %v434_v35, %v426_v34 }
 0x103   : > { %2534 = vmatprep.subr.bf16.mxu1 %v2533_v45  ;;  %v859_v41 = vld [vmem:[#allocation5 + $0xec0] sm:$0xff]  ;;  %v868_v45 = vld [vmem:[#allocation5 + $0xf08] sm:$0xff] }
 0x104   : > { %v2427_v49 = vpack.c.bf16 %v859_v41, %v851_v40  ;;  %v431_v40 = vld [vmem:[#allocation5 + $0x160] sm:$0xff]  ;;  %v425_v41 = vld [vmem:[#allocation5 + $0x130] sm:$0xff] }
 0x105   : > { %2408 = vmatpush1.bf16.msra.mxu0 %v2407_v51  ;;  %v2429_v51 = vpack.c.bf16 %v876_v46, %v868_v45  ;;  %v448_v45 = vld [vmem:[#allocation5 + $0x1e8] sm:$0xff]  ;;  %v442_v46 = vld [vmem:[#allocation5 + $0x1b8] sm:$0xff] }
 0x106   : > { %2536 = vmatpush1.bf16.msra.mxu1 %v2535_v52  ;;  %2410 = vmatprep.subr.bf16.mxu0 %v2409_v53  ;;  %v867_v52 = vld [vmem:[#allocation5 + $0xf00] sm:$0xff]  ;;  %v2705_v54 = vpack.c.bf16 %v450_v47, %v442_v46 }
 0x107   : > { %2538 = vmatprep.subr.bf16.mxu1 %v2537_v57  ;;  %v875_v53 = vld [vmem:[#allocation5 + $0xf40] sm:$0xff]  ;;  %v884_v57 = vld [vmem:[#allocation5 + $0xf88] sm:$0xff] }
 0x108   : > { %v2431_v61 = vpack.c.bf16 %v875_v53, %v867_v52  ;;  %v447_v52 = vld [vmem:[#allocation5 + $0x1e0] sm:$0xff]  ;;  %v441_v53 = vld [vmem:[#allocation5 + $0x1b0] sm:$0xff] }
 0x109   : > { %2412 = vmatpush1.bf16.msra.mxu0 %v2411_v63  ;;  %v2433_v63 = vpack.c.bf16 %v892_v58, %v884_v57  ;;  %v464_v57 = vld [vmem:[#allocation5 + $0x268] sm:$0xff]  ;;  %v458_v58 = vld [vmem:[#allocation5 + $0x238] sm:$0xff] }
 0x10a   : > { %2540 = vmatpush1.bf16.msra.mxu1 %v2539_v0  ;;  %2414 = vmatprep.subr.bf16.mxu0 %v2413_v1  ;;  %v883_v0 = vld [vmem:[#allocation5 + $0xf80] sm:$0xff] }
 0x10b   : > { %2542 = vmatprep.subr.bf16.mxu1 %v2541_v5  ;;  %v891_v1 = vld [vmem:[#allocation5 + $0xfc0] sm:$0xff]  ;;  %v392_v5 = vld [vmem:[#allocation5 + $0x28] sm:$0xff] }
 0x10c   : > { %v2435_v9 = vpack.c.bf16 %v891_v1, %v883_v0  ;;  %v457_v0 = vld [vmem:[#allocation5 + $0x230] sm:$0xff]  ;;  %v2709_v1 = vpack.c.bf16 %v466_v59, %v458_v58 }
 0x10d   : > { %2416 = vmatpush1.bf16.msra.mxu0 %v2415_v11  ;;  %v2565_v11 = vpack.c.bf16 %v400_v6, %v392_v5  ;;  %v474_v5 = vld [vmem:[#allocation5 + $0x2b8] sm:$0xff]  ;;  %v2711_v8 = vpack.c.bf16 %v465_v2, %v457_v0  ;;  %v552_v0 = vld [vmem:[#allocation5 + $0x528] sm:$0xff] }
 0x10e   : > { %2544 = vmatpush1.bf16.msra.mxu1 %v2543_v12  ;;  %2418 = vmatprep.subr.bf16.mxu0 %v2417_v13  ;;  %v391_v12 = vld [vmem:[#allocation5 + $0x20] sm:$0xff]  ;;  %v482_v6 = vld [vmem:[#allocation5 + $0x2f8] sm:$0xff] }
 0x10f   : > { %2546 = vmatprep.subr.bf16.mxu1 %v2545_v18  ;;  %v399_v13 = vld [vmem:[#allocation5 + $0x60] sm:$0xff]  ;;  %v408_v18 = vld [vmem:[#allocation5 + $0xa8] sm:$0xff]  ;;  %v554_v2 = vld [vmem:[#allocation5 + $0x538] sm:$0xff] }
 0x110   : > { %v2567_v23 = vpack.c.bf16 %v399_v13, %v391_v12  ;;  %v473_v12 = vld [vmem:[#allocation5 + $0x2b0] sm:$0xff]  ;;  %v2713_v13 = vpack.c.bf16 %v482_v6, %v474_v5 }
 0x111   : > { %2420 = vmatpush1.bf16.msra.mxu0 %v2419_v25  ;;  %v2695_v25 = vpack.c.bf16 %v401_v17, %v393_v14  ;;  %v481_v14 = vld [vmem:[#allocation5 + $0x2f0] sm:$0xff]  ;;  %v496_v17 = vld [vmem:[#allocation5 + $0x368] sm:$0xff] }
 0x112   : > { %2548 = vmatpush1.bf16.msra.mxu1 %v2547_v26  ;;  %2422 = vmatprep.subr.bf16.mxu0 %v2421_v27  ;;  %v2569_v26 = vpack.c.bf16 %v416_v19, %v408_v18  ;;  %v407_v27 = vld [vmem:[#allocation5 + $0xa0] sm:$0xff]  ;;  %v490_v18 = vld [vmem:[#allocation5 + $0x338] sm:$0xff]  ;;  %v2715_v21 = vpack.c.bf16 %v481_v14, %v473_v12  ;;  %v568_v12 = vld [vmem:[#allocation5 + $0x5a8] sm:$0xff] }
 0x113   : > { %2550 = vmatprep.subr.bf16.mxu1 %v2549_v31  ;;  %v417_v31 = vld [vmem:[#allocation5 + $0xf0] sm:$0xff]  ;;  %v2571_v36 = vpack.c.bf16 %v415_v28, %v407_v27  ;;  %v498_v19 = vld [vmem:[#allocation5 + $0x378] sm:$0xff] }
 0x114   : > { %v2717_v27 = vpack.c.bf16 %v498_v19, %v490_v18  ;;  %v497_v28 = vld [vmem:[#allocation5 + $0x370] sm:$0xff]  ;;  %v570_v14 = vld [vmem:[#allocation5 + $0x5b8] sm:$0xff] }
 0x115   : > { %2424 = vmatpush1.bf16.msra.mxu0 %v2423_v37  ;;  %v2699_v37 = vpack.c.bf16 %v417_v31, %v409_v29  ;;  %v504_v29 = vld [vmem:[#allocation5 + $0x3a8] sm:$0xff]  ;;  %v506_v31 = vld [vmem:[#allocation5 + $0x3b8] sm:$0xff] }
 0x116   : > { %2552 = vmatpush1.bf16.msra.mxu1 %v2551_v38  ;;  %2426 = vmatprep.subr.bf16.mxu0 %v2425_v39  ;;  %v2573_v38 = vpack.c.bf16 %v432_v33, %v424_v32  ;;  %v423_v39 = vld [vmem:[#allocation5 + $0x120] sm:$0xff]  ;;  %v514_v32 = vld [vmem:[#allocation5 + $0x3f8] sm:$0xff] }
 0x117   : > { %2554 = vmatprep.subr.bf16.mxu1 %v2553_v43  ;;  %v433_v43 = vld [vmem:[#allocation5 + $0x170] sm:$0xff]  ;;  %v2575_v48 = vpack.c.bf16 %v431_v40, %v423_v39  ;;  %v2721_v39 = vpack.c.bf16 %v514_v32, %v506_v31 }
 0x118   : > { %v513_v40 = vld [vmem:[#allocation5 + $0x3f0] sm:$0xff] }
 0x119   : > { %2428 = vmatpush1.bf16.msra.mxu0 %v2427_v49  ;;  %v2703_v49 = vpack.c.bf16 %v433_v43, %v425_v41  ;;  %v520_v41 = vld [vmem:[#allocation5 + $0x428] sm:$0xff]  ;;  %v522_v43 = vld [vmem:[#allocation5 + $0x438] sm:$0xff] }
 0x11a   : > { %2556 = vmatpush1.bf16.msra.mxu1 %v2555_v50  ;;  %2430 = vmatprep.subr.bf16.mxu0 %v2429_v51  ;;  %v2577_v50 = vpack.c.bf16 %v448_v45, %v440_v44  ;;  %v439_v51 = vld [vmem:[#allocation5 + $0x1a0] sm:$0xff]  ;;  %v530_v44 = vld [vmem:[#allocation5 + $0x478] sm:$0xff] }
 0x11b   : > { %2558 = vmatprep.subr.bf16.mxu1 %v2557_v55  ;;  %v449_v55 = vld [vmem:[#allocation5 + $0x1f0] sm:$0xff]  ;;  %v2579_v60 = vpack.c.bf16 %v447_v52, %v439_v51  ;;  %v2725_v51 = vpack.c.bf16 %v530_v44, %v522_v43 }
 0x11c   : > { %v529_v52 = vld [vmem:[#allocation5 + $0x470] sm:$0xff] }
 0x11d   : > { %2432 = vmatpush1.bf16.msra.mxu0 %v2431_v61  ;;  %v2581_v61 = vpack.c.bf16 %v464_v57, %v456_v56  ;;  %v546_v56 = vld [vmem:[#allocation5 + $0x4f8] sm:$0xff] }
 0x11e   : > { %2560 = vmatpush1.bf16.msra.mxu1 %v2559_v62  ;;  %2434 = vmatprep.subr.bf16.mxu0 %v2433_v63  ;;  %v455_v62 = vld [vmem:[#allocation5 + $0x220] sm:$0xff] }
 0x11f   : > { %2562 = vmatprep.subr.bf16.mxu1 %v2561_v3  ;;  %v463_v63 = vld [vmem:[#allocation5 + $0x260] sm:$0xff]  ;;  %v472_v3 = vld [vmem:[#allocation5 + $0x2a8] sm:$0xff] }
 0x120   : > { %v2583_v7 = vpack.c.bf16 %v463_v63, %v455_v62  ;;  %v545_v63 = vld [vmem:[#allocation5 + $0x4f0] sm:$0xff] }
 0x121   : > { %2436 = vmatpush1.bf16.msra.mxu0 %v2435_v9  ;;  %v2585_v9 = vpack.c.bf16 %v480_v4, %v472_v3  ;;  %v562_v3 = vld [vmem:[#allocation5 + $0x578] sm:$0xff] }
 0x122   : > { %2564 = vmatpush1.bf16.msra.mxu1 %v2563_v10  ;;  %2566 = vmatprep.subr.bf16.mxu0 %v2565_v11  ;;  %v471_v10 = vld [vmem:[#allocation5 + $0x2a0] sm:$0xff] }
 0x123   : > { %2694 = vmatprep.subr.bf16.mxu1 %v2693_v15  ;;  %v479_v11 = vld [vmem:[#allocation5 + $0x2e0] sm:$0xff]  ;;  %v488_v15 = vld [vmem:[#allocation5 + $0x328] sm:$0xff] }
 0x124   : > { %1077 = vmatmul.mubr.f32.vlgmr.msra.gmra.mrb[0].mxu0 %v385_v22  ;;  %v2587_v20 = vpack.c.bf16 %v479_v11, %v471_v10  ;;  %v2733_v10 = vpack.c.bf16 %v562_v3, %v554_v2  ;;  %v561_v11 = vld [vmem:[#allocation5 + $0x570] sm:$0xff] }
 0x125   : > { %1219 = vmatmul.mubr.f32.vlgmr.msra.gmra.mrb[0].mxu1 %v385_v22  ;;  %2568 = vmatpush1.bf16.msra.mxu0 %v2567_v23  ;;  %v2589_v22 = vpack.c.bf16 %v496_v17, %v488_v15  ;;  %v487_v23 = vld [vmem:[#allocation5 + $0x320] sm:$0xff]  ;;  %v578_v15 = vld [vmem:[#allocation5 + $0x5f8] sm:$0xff] }
 0x126   : > { %2696 = vmatpush1.bf16.msra.mxu1 %v2695_v25  ;;  %2570 = vmatprep.subr.bf16.mxu0 %v2569_v26  ;;  %v495_v25 = vld [vmem:[#allocation5 + $0x360] sm:$0xff]  ;;  %v489_v26 = vld [vmem:[#allocation5 + $0x330] sm:$0xff] }
 0x127   : > { %2698 = vmatprep.subr.bf16.mxu1 %v2697_v30  ;;  %1289 = vmatprep.mubr.f32.mxu0 %v3601_v16  ;;  %v512_v30 = vld [vmem:[#allocation5 + $0x3e8] sm:$0xff]  ;;  %v2591_v33 = vpack.c.bf16 %v495_v25, %v487_v23  ;;  %v2719_v34 = vpack.c.bf16 %v497_v28, %v489_v26  ;;  %v2737_v23 = vpack.c.bf16 %v578_v15, %v570_v14  ;;  %v577_v25 = vld [vmem:[#allocation5 + $0x5f0] sm:$0xff]  ;;  %v586_v28 = vld [vmem:[#allocation5 + $0x638] sm:$0xff] }
 0x128   : > { %1431 = vmatprep.mubr.f32.mxu1 %v3601_v16  ;;  %v2707_v16 = vpack.c.bf16 %v449_v55, %v441_v53  ;;  %v2593_v35 = vpack.c.bf16 %v512_v30, %v504_v29  ;;  %v536_v53 = vld [vmem:[#allocation5 + $0x4a8] sm:$0xff]  ;;  %v538_v55 = vld [vmem:[#allocation5 + $0x4b8] sm:$0xff] }
 0x129   : > { %2572 = vmatpush1.bf16.msra.mxu0 %v2571_v36  ;;  %v503_v36 = vld [vmem:[#allocation5 + $0x3a0] sm:$0xff]  ;;  %v2729_v62 = vpack.c.bf16 %v546_v56, %v538_v55  ;;  %v584_v26 = vld [vmem:[#allocation5 + $0x628] sm:$0xff]  ;;  %v594_v29 = vld [vmem:[#allocation5 + $0x678] sm:$0xff] }
 0x12a   : > { %2700 = vmatpush1.bf16.msra.mxu1 %v2699_v37  ;;  %2574 = vmatprep.subr.bf16.mxu0 %v2573_v38  ;;  %v511_v37 = vld [vmem:[#allocation5 + $0x3e0] sm:$0xff]  ;;  %v505_v38 = vld [vmem:[#allocation5 + $0x3b0] sm:$0xff] }
 0x12b   : > { %2702 = vmatprep.subr.bf16.mxu1 %v2701_v42  ;;  %v528_v42 = vld [vmem:[#allocation5 + $0x468] sm:$0xff]  ;;  %v2595_v45 = vpack.c.bf16 %v511_v37, %v503_v36  ;;  %v2723_v46 = vpack.c.bf16 %v513_v40, %v505_v38  ;;  %v2741_v36 = vpack.c.bf16 %v594_v29, %v586_v28  ;;  %v593_v37 = vld [vmem:[#allocation5 + $0x670] sm:$0xff]  ;;  %v602_v40 = vld [vmem:[#allocation5 + $0x6b8] sm:$0xff] }
 0x12c   : > { %v2597_v47 = vpack.c.bf16 %v528_v42, %v520_v41  ;;  %v600_v38 = vld [vmem:[#allocation5 + $0x6a8] sm:$0xff]  ;;  %v610_v41 = vld [vmem:[#allocation5 + $0x6f8] sm:$0xff] }
 0x12d   : > { %2576 = vmatpush1.bf16.msra.mxu0 %v2575_v48  ;;  %v519_v48 = vld [vmem:[#allocation5 + $0x420] sm:$0xff] }
 0x12e   : > { %2704 = vmatpush1.bf16.msra.mxu1 %v2703_v49  ;;  %2578 = vmatprep.subr.bf16.mxu0 %v2577_v50  ;;  %v527_v49 = vld [vmem:[#allocation5 + $0x460] sm:$0xff]  ;;  %v521_v50 = vld [vmem:[#allocation5 + $0x430] sm:$0xff] }
 0x12f   : > { %2706 = vmatprep.subr.bf16.mxu1 %v2705_v54  ;;  %v544_v54 = vld [vmem:[#allocation5 + $0x4e8] sm:$0xff]  ;;  %v2599_v57 = vpack.c.bf16 %v527_v49, %v519_v48  ;;  %v2727_v58 = vpack.c.bf16 %v529_v52, %v521_v50  ;;  %v2745_v48 = vpack.c.bf16 %v610_v41, %v602_v40  ;;  %v609_v49 = vld [vmem:[#allocation5 + $0x6f0] sm:$0xff]  ;;  %v618_v52 = vld [vmem:[#allocation5 + $0x738] sm:$0xff] }
 0x130   : > { %v2601_v59 = vpack.c.bf16 %v544_v54, %v536_v53  ;;  %v616_v50 = vld [vmem:[#allocation5 + $0x728] sm:$0xff]  ;;  %v626_v53 = vld [vmem:[#allocation5 + $0x778] sm:$0xff] }
 0x131   : > { %2580 = vmatpush1.bf16.msra.mxu0 %v2579_v60  ;;  %v535_v60 = vld [vmem:[#allocation5 + $0x4a0] sm:$0xff] }
 0x132   : > { %2708 = vmatpush1.bf16.msra.mxu1 %v2707_v16  ;;  %2582 = vmatprep.subr.bf16.mxu0 %v2581_v61  ;;  %v543_v16 = vld [vmem:[#allocation5 + $0x4e0] sm:$0xff]  ;;  %v537_v61 = vld [vmem:[#allocation5 + $0x4b0] sm:$0xff] }
 0x133   : > { %2710 = vmatprep.subr.bf16.mxu1 %v2709_v1  ;;  %v560_v1 = vld [vmem:[#allocation5 + $0x568] sm:$0xff]  ;;  %v2603_v4 = vpack.c.bf16 %v543_v16, %v535_v60  ;;  %v2731_v5 = vpack.c.bf16 %v545_v63, %v537_v61  ;;  %v2749_v60 = vpack.c.bf16 %v626_v53, %v618_v52  ;;  %v625_v16 = vld [vmem:[#allocation5 + $0x770] sm:$0xff]  ;;  %v634_v63 = vld [vmem:[#allocation5 + $0x7b8] sm:$0xff] }
 0x134   : > { %v2605_v6 = vpack.c.bf16 %v560_v1, %v552_v0  ;;  %v632_v61 = vld [vmem:[#allocation5 + $0x7a8] sm:$0xff]  ;;  %v642_v0 = vld [vmem:[#allocation5 + $0x7f8] sm:$0xff] }
 0x135   : > { %2584 = vmatpush1.bf16.msra.mxu0 %v2583_v7  ;;  %v551_v7 = vld [vmem:[#allocation5 + $0x520] sm:$0xff] }
 0x136   : > { %2712 = vmatpush1.bf16.msra.mxu1 %v2711_v8  ;;  %2586 = vmatprep.subr.bf16.mxu0 %v2585_v9  ;;  %v559_v8 = vld [vmem:[#allocation5 + $0x560] sm:$0xff]  ;;  %v553_v9 = vld [vmem:[#allocation5 + $0x530] sm:$0xff] }
 0x137   : > { %2714 = vmatprep.subr.bf16.mxu1 %v2713_v13  ;;  %v576_v13 = vld [vmem:[#allocation5 + $0x5e8] sm:$0xff]  ;;  %v2607_v17 = vpack.c.bf16 %v559_v8, %v551_v7  ;;  %v2735_v18 = vpack.c.bf16 %v561_v11, %v553_v9  ;;  %v2753_v7 = vpack.c.bf16 %v642_v0, %v634_v63  ;;  %v641_v8 = vld [vmem:[#allocation5 + $0x7f0] sm:$0xff]  ;;  %v650_v11 = vld [vmem:[#allocation5 + $0x838] sm:$0xff] }
 0x138   : > { %v2609_v19 = vpack.c.bf16 %v576_v13, %v568_v12  ;;  %v648_v9 = vld [vmem:[#allocation5 + $0x828] sm:$0xff]  ;;  %v658_v12 = vld [vmem:[#allocation5 + $0x878] sm:$0xff] }
 0x139   : > { %2588 = vmatpush1.bf16.msra.mxu0 %v2587_v20  ;;  %v567_v20 = vld [vmem:[#allocation5 + $0x5a0] sm:$0xff] }
 0x13a   : > { %2716 = vmatpush1.bf16.msra.mxu1 %v2715_v21  ;;  %2590 = vmatprep.subr.bf16.mxu0 %v2589_v22  ;;  %v575_v21 = vld [vmem:[#allocation5 + $0x5e0] sm:$0xff]  ;;  %v569_v22 = vld [vmem:[#allocation5 + $0x5b0] sm:$0xff] }
 0x13b   : > { %2718 = vmatprep.subr.bf16.mxu1 %v2717_v27  ;;  %v592_v27 = vld [vmem:[#allocation5 + $0x668] sm:$0xff]  ;;  %v2611_v30 = vpack.c.bf16 %v575_v21, %v567_v20  ;;  %v2739_v31 = vpack.c.bf16 %v577_v25, %v569_v22  ;;  %v2757_v20 = vpack.c.bf16 %v658_v12, %v650_v11  ;;  %v657_v21 = vld [vmem:[#allocation5 + $0x870] sm:$0xff]  ;;  %v666_v25 = vld [vmem:[#allocation5 + $0x8b8] sm:$0xff] }
 0x13c   : > { %v2613_v32 = vpack.c.bf16 %v592_v27, %v584_v26  ;;  %v664_v22 = vld [vmem:[#allocation5 + $0x8a8] sm:$0xff]  ;;  %v674_v26 = vld [vmem:[#allocation5 + $0x8f8] sm:$0xff] }
 0x13d   : > { %2592 = vmatpush1.bf16.msra.mxu0 %v2591_v33  ;;  %v583_v33 = vld [vmem:[#allocation5 + $0x620] sm:$0xff] }
 0x13e   : > { %2720 = vmatpush1.bf16.msra.mxu1 %v2719_v34  ;;  %2594 = vmatprep.subr.bf16.mxu0 %v2593_v35  ;;  %v591_v34 = vld [vmem:[#allocation5 + $0x660] sm:$0xff]  ;;  %v585_v35 = vld [vmem:[#allocation5 + $0x630] sm:$0xff] }
 0x13f   : > { %2722 = vmatprep.subr.bf16.mxu1 %v2721_v39  ;;  %v608_v39 = vld [vmem:[#allocation5 + $0x6e8] sm:$0xff]  ;;  %v2615_v42 = vpack.c.bf16 %v591_v34, %v583_v33  ;;  %v2743_v43 = vpack.c.bf16 %v593_v37, %v585_v35  ;;  %v2761_v33 = vpack.c.bf16 %v674_v26, %v666_v25  ;;  %v673_v34 = vld [vmem:[#allocation5 + $0x8f0] sm:$0xff]  ;;  %v3059_v37 = vld [vmem:[%s3586_s25] sm:$0xff] }
 0x140   : > { %v2617_v44 = vpack.c.bf16 %v608_v39, %v600_v38  ;;  %v680_v35 = vld [vmem:[#allocation5 + $0x928] sm:$0xff]  ;;  %v682_v38 = vld [vmem:[#allocation5 + $0x938] sm:$0xff] }
 0x141   : > { %2596 = vmatpush1.bf16.msra.mxu0 %v2595_v45  ;;  %v599_v45 = vld [vmem:[#allocation5 + $0x6a0] sm:$0xff]  ;;  %v690_v39 = vld [vmem:[#allocation5 + $0x978] sm:$0xff] }
 0x142   : > { %2724 = vmatpush1.bf16.msra.mxu1 %v2723_v46  ;;  %2598 = vmatprep.subr.bf16.mxu0 %v2597_v47  ;;  %v607_v46 = vld [vmem:[#allocation5 + $0x6e0] sm:$0xff]  ;;  %v601_v47 = vld [vmem:[#allocation5 + $0x6b0] sm:$0xff] }
 0x143   : > { %2726 = vmatprep.subr.bf16.mxu1 %v2725_v51  ;;  %v624_v51 = vld [vmem:[#allocation5 + $0x768] sm:$0xff]  ;;  %v2619_v54 = vpack.c.bf16 %v607_v46, %v599_v45  ;;  %v2747_v55 = vpack.c.bf16 %v609_v49, %v601_v47  ;;  %v681_v45 = vld [vmem:[#allocation5 + $0x930] sm:$0xff]  ;;  %v2765_v46 = vpack.c.bf16 %v690_v39, %v682_v38  ;;  %v759_v39 = vld [vmem:[#allocation5 + $0xba0] sm:$0xff] }
 0x144   : > { %v2621_v56 = vpack.c.bf16 %v624_v51, %v616_v50  ;;  %v689_v47 = vld [vmem:[#allocation5 + $0x970] sm:$0xff]  ;;  %v704_v49 = vld [vmem:[#allocation5 + $0x9e8] sm:$0xff]  ;;  %v698_v50 = vld [vmem:[#allocation5 + $0x9b8] sm:$0xff] }
 0x145   : > { %2600 = vmatpush1.bf16.msra.mxu0 %v2599_v57  ;;  %v615_v57 = vld [vmem:[#allocation5 + $0x720] sm:$0xff]  ;;  %v706_v51 = vld [vmem:[#allocation5 + $0x9f8] sm:$0xff]  ;;  %v2767_v53 = vpack.c.bf16 %v689_v47, %v681_v45  ;;  %v784_v45 = vld [vmem:[#allocation5 + $0xc68] sm:$0xff] }
 0x146   : > { %2728 = vmatpush1.bf16.msra.mxu1 %v2727_v58  ;;  %2602 = vmatprep.subr.bf16.mxu0 %v2601_v59  ;;  %v623_v58 = vld [vmem:[#allocation5 + $0x760] sm:$0xff]  ;;  %v617_v59 = vld [vmem:[#allocation5 + $0x730] sm:$0xff]  ;;  %v786_v47 = vld [vmem:[#allocation5 + $0xc78] sm:$0xff] }
 0x147   : > { %2730 = vmatprep.subr.bf16.mxu1 %v2729_v62  ;;  %v640_v62 = vld [vmem:[#allocation5 + $0x7e8] sm:$0xff]  ;;  %v2623_v1 = vpack.c.bf16 %v623_v58, %v615_v57  ;;  %v2751_v2 = vpack.c.bf16 %v625_v16, %v617_v59  ;;  %v697_v57 = vld [vmem:[#allocation5 + $0x9b0] sm:$0xff]  ;;  %v2769_v58 = vpack.c.bf16 %v706_v51, %v698_v50  ;;  %v775_v51 = vld [vmem:[#allocation5 + $0xc20] sm:$0xff] }
 0x148   : > { %v2625_v3 = vpack.c.bf16 %v640_v62, %v632_v61  ;;  %v705_v59 = vld [vmem:[#allocation5 + $0x9f0] sm:$0xff]  ;;  %v720_v16 = vld [vmem:[#allocation5 + $0xa68] sm:$0xff]  ;;  %v714_v61 = vld [vmem:[#allocation5 + $0xa38] sm:$0xff] }
 0x149   : > { %2604 = vmatpush1.bf16.msra.mxu0 %v2603_v4  ;;  %v631_v4 = vld [vmem:[#allocation5 + $0x7a0] sm:$0xff]  ;;  %v722_v62 = vld [vmem:[#allocation5 + $0xa78] sm:$0xff] }
 0x14a   : > { %2732 = vmatpush1.bf16.msra.mxu1 %v2731_v5  ;;  %2606 = vmatprep.subr.bf16.mxu0 %v2605_v6  ;;  %v639_v5 = vld [vmem:[#allocation5 + $0x7e0] sm:$0xff]  ;;  %v633_v6 = vld [vmem:[#allocation5 + $0x7b0] sm:$0xff] }
 0x14b   : > { %2734 = vmatprep.subr.bf16.mxu1 %v2733_v10  ;;  %v656_v10 = vld [vmem:[#allocation5 + $0x868] sm:$0xff]  ;;  %v2627_v13 = vpack.c.bf16 %v639_v5, %v631_v4  ;;  %v2755_v14 = vpack.c.bf16 %v641_v8, %v633_v6  ;;  %v2773_v4 = vpack.c.bf16 %v722_v62, %v714_v61  ;;  %v721_v5 = vld [vmem:[#allocation5 + $0xa70] sm:$0xff]  ;;  %v730_v8 = vld [vmem:[#allocation5 + $0xab8] sm:$0xff] }
 0x14c   : > { %v2629_v15 = vpack.c.bf16 %v656_v10, %v648_v9  ;;  %v728_v6 = vld [vmem:[#allocation5 + $0xaa8] sm:$0xff]  ;;  %v738_v9 = vld [vmem:[#allocation5 + $0xaf8] sm:$0xff]  ;;  %v791_v62 = vld [vmem:[#allocation5 + $0xca0] sm:$0xff] }
 0x14d   : > { %2608 = vmatpush1.bf16.msra.mxu0 %v2607_v17  ;;  %v647_v17 = vld [vmem:[#allocation5 + $0x820] sm:$0xff] }
 0x14e   : > { %2736 = vmatpush1.bf16.msra.mxu1 %v2735_v18  ;;  %2610 = vmatprep.subr.bf16.mxu0 %v2609_v19  ;;  %v655_v18 = vld [vmem:[#allocation5 + $0x860] sm:$0xff]  ;;  %v649_v19 = vld [vmem:[#allocation5 + $0x830] sm:$0xff] }
 0x14f   : > { %2738 = vmatprep.subr.bf16.mxu1 %v2737_v23  ;;  %v672_v23 = vld [vmem:[#allocation5 + $0x8e8] sm:$0xff]  ;;  %v2631_v27 = vpack.c.bf16 %v655_v18, %v647_v17  ;;  %v2759_v28 = vpack.c.bf16 %v657_v21, %v649_v19  ;;  %v2777_v17 = vpack.c.bf16 %v738_v9, %v730_v8  ;;  %v737_v18 = vld [vmem:[#allocation5 + $0xaf0] sm:$0xff]  ;;  %v746_v21 = vld [vmem:[#allocation5 + $0xb38] sm:$0xff] }
 0x150   : > { %v2633_v29 = vpack.c.bf16 %v672_v23, %v664_v22  ;;  %v744_v19 = vld [vmem:[#allocation5 + $0xb28] sm:$0xff]  ;;  %v754_v22 = vld [vmem:[#allocation5 + $0xb78] sm:$0xff]  ;;  %v807_v9 = vld [vmem:[#allocation5 + $0xd20] sm:$0xff] }
 0x151   : > { %2612 = vmatpush1.bf16.msra.mxu0 %v2611_v30  ;;  %v663_v30 = vld [vmem:[#allocation5 + $0x8a0] sm:$0xff] }
 0x152   : > { %2740 = vmatpush1.bf16.msra.mxu1 %v2739_v31  ;;  %2614 = vmatprep.subr.bf16.mxu0 %v2613_v32  ;;  %v671_v31 = vld [vmem:[#allocation5 + $0x8e0] sm:$0xff]  ;;  %v665_v32 = vld [vmem:[#allocation5 + $0x8b0] sm:$0xff] }
 0x153   : > { %2742 = vmatprep.subr.bf16.mxu1 %v2741_v36  ;;  %v688_v36 = vld [vmem:[#allocation5 + $0x968] sm:$0xff]  ;;  %v2635_v40 = vpack.c.bf16 %v671_v31, %v663_v30  ;;  %v2763_v41 = vpack.c.bf16 %v673_v34, %v665_v32  ;;  %v2781_v30 = vpack.c.bf16 %v754_v22, %v746_v21  ;;  %v753_v31 = vld [vmem:[#allocation5 + $0xb70] sm:$0xff]  ;;  %v762_v34 = vld [vmem:[#allocation5 + $0xbb8] sm:$0xff] }
 0x154   : > { %v760_v32 = vld [vmem:[#allocation5 + $0xba8] sm:$0xff]  ;;  %v823_v22 = vld [vmem:[#allocation5 + $0xda0] sm:$0xff] }
 0x155   : > { %2616 = vmatpush1.bf16.msra.mxu0 %v2615_v42  ;;  %v2637_v42 = vpack.c.bf16 %v688_v36, %v680_v35  ;;  %v770_v35 = vld [vmem:[#allocation5 + $0xbf8] sm:$0xff] }
 0x156   : > { %2744 = vmatpush1.bf16.msra.mxu1 %v2743_v43  ;;  %2618 = vmatprep.subr.bf16.mxu0 %v2617_v44  ;;  %v679_v43 = vld [vmem:[#allocation5 + $0x920] sm:$0xff] }
 0x157   : > { %2746 = vmatprep.subr.bf16.mxu1 %v2745_v48  ;;  %v687_v44 = vld [vmem:[#allocation5 + $0x960] sm:$0xff]  ;;  %v696_v48 = vld [vmem:[#allocation5 + $0x9a8] sm:$0xff] }
 0x158   : > { %v2639_v52 = vpack.c.bf16 %v687_v44, %v679_v43  ;;  %v769_v43 = vld [vmem:[#allocation5 + $0xbf0] sm:$0xff]  ;;  %v776_v44 = vld [vmem:[#allocation5 + $0xc28] sm:$0xff] }
 0x159   : > { %2620 = vmatpush1.bf16.msra.mxu0 %v2619_v54  ;;  %v2641_v54 = vpack.c.bf16 %v704_v49, %v696_v48  ;;  %v2661_v50 = vpack.c.bf16 %v784_v45, %v776_v44 }
 0x15a   : > { %2748 = vmatpush1.bf16.msra.mxu1 %v2747_v55  ;;  %2622 = vmatprep.subr.bf16.mxu0 %v2621_v56  ;;  %v695_v55 = vld [vmem:[#allocation5 + $0x9a0] sm:$0xff] }
 0x15b   : > { %2750 = vmatprep.subr.bf16.mxu1 %v2749_v60  ;;  %v703_v56 = vld [vmem:[#allocation5 + $0x9e0] sm:$0xff]  ;;  %v712_v60 = vld [vmem:[#allocation5 + $0xa28] sm:$0xff] }
 0x15c   : > { %v2643_v63 = vpack.c.bf16 %v703_v56, %v695_v55  ;;  %v2645_v0 = vpack.c.bf16 %v720_v16, %v712_v60  ;;  %v785_v55 = vld [vmem:[#allocation5 + $0xc70] sm:$0xff]  ;;  %v792_v56 = vld [vmem:[#allocation5 + $0xca8] sm:$0xff] }
 0x15d   : > { %2624 = vmatpush1.bf16.msra.mxu0 %v2623_v1  ;;  %v711_v1 = vld [vmem:[#allocation5 + $0xa20] sm:$0xff] }
 0x15e   : > { %2752 = vmatpush1.bf16.msra.mxu1 %v2751_v2  ;;  %2626 = vmatprep.subr.bf16.mxu0 %v2625_v3  ;;  %v719_v2 = vld [vmem:[#allocation5 + $0xa60] sm:$0xff]  ;;  %v713_v3 = vld [vmem:[#allocation5 + $0xa30] sm:$0xff] }
 0x15f   : > { %2754 = vmatprep.subr.bf16.mxu1 %v2753_v7  ;;  %v736_v7 = vld [vmem:[#allocation5 + $0xae8] sm:$0xff]  ;;  %v2647_v10 = vpack.c.bf16 %v719_v2, %v711_v1  ;;  %v2775_v11 = vpack.c.bf16 %v721_v5, %v713_v3  ;;  %v801_v1 = vld [vmem:[#allocation5 + $0xcf0] sm:$0xff]  ;;  %v818_v5 = vld [vmem:[#allocation5 + $0xd78] sm:$0xff] }
 0x160   : > { %v2649_v12 = vpack.c.bf16 %v736_v7, %v728_v6  ;;  %v808_v2 = vld [vmem:[#allocation5 + $0xd28] sm:$0xff] }
 0x161   : > { %2628 = vmatpush1.bf16.msra.mxu0 %v2627_v13  ;;  %v727_v13 = vld [vmem:[#allocation5 + $0xaa0] sm:$0xff]  ;;  %v816_v3 = vld [vmem:[#allocation5 + $0xd68] sm:$0xff] }
 0x162   : > { %2756 = vmatpush1.bf16.msra.mxu1 %v2755_v14  ;;  %2630 = vmatprep.subr.bf16.mxu0 %v2629_v15  ;;  %v735_v14 = vld [vmem:[#allocation5 + $0xae0] sm:$0xff]  ;;  %v729_v15 = vld [vmem:[#allocation5 + $0xab0] sm:$0xff]  ;;  %v2669_v8 = vpack.c.bf16 %v816_v3, %v808_v2 }
 0x163   : > { %2758 = vmatprep.subr.bf16.mxu1 %v2757_v20  ;;  %v752_v20 = vld [vmem:[#allocation5 + $0xb68] sm:$0xff]  ;;  %v2651_v23 = vpack.c.bf16 %v735_v14, %v727_v13  ;;  %v2779_v25 = vpack.c.bf16 %v737_v18, %v729_v15  ;;  %v817_v13 = vld [vmem:[#allocation5 + $0xd70] sm:$0xff]  ;;  %v834_v18 = vld [vmem:[#allocation5 + $0xdf8] sm:$0xff] }
 0x164   : > { %1290 = vmatmul.mubr.f32.vlgmr.msra.gmra.mrb[2].mxu0 %v3059_v37  ;;  %v2653_v26 = vpack.c.bf16 %v752_v20, %v744_v19  ;;  %v824_v14 = vld [vmem:[#allocation5 + $0xda8] sm:$0xff] }
 0x165   : > { %2632 = vmatpush1.bf16.msra.mxu0 %v2631_v27  ;;  %1432 = vmatmul.mubr.f32.vlgmr.msra.gmra.mrb[2].mxu1 %v3059_v37  ;;  %v743_v27 = vld [vmem:[#allocation5 + $0xb20] sm:$0xff]  ;;  %v832_v15 = vld [vmem:[#allocation5 + $0xde8] sm:$0xff] }
 0x166   : > { %2760 = vmatpush1.bf16.msra.mxu1 %v2759_v28  ;;  %2634 = vmatprep.subr.bf16.mxu0 %v2633_v29  ;;  %v751_v28 = vld [vmem:[#allocation5 + $0xb60] sm:$0xff]  ;;  %v745_v29 = vld [vmem:[#allocation5 + $0xb30] sm:$0xff]  ;;  %v2673_v21 = vpack.c.bf16 %v832_v15, %v824_v14 }
 0x167   : > { %2762 = vmatprep.subr.bf16.mxu1 %v2761_v33  ;;  %1360 = vmatprep.mubr.f32.mxu0 %v3607_v24  ;;  %v768_v33 = vld [vmem:[#allocation5 + $0xbe8] sm:$0xff]  ;;  %v2655_v36 = vpack.c.bf16 %v751_v28, %v743_v27  ;;  %v2783_v37 = vpack.c.bf16 %v753_v31, %v745_v29  ;;  %v833_v27 = vld [vmem:[#allocation5 + $0xdf0] sm:$0xff]  ;;  %v850_v31 = vld [vmem:[#allocation5 + $0xe78] sm:$0xff] }
 0x168   : > { %1502 = vmatprep.mubr.f32.mxu1 %v3607_v24  ;;  %v2771_v24 = vpack.c.bf16 %v705_v59, %v697_v57  ;;  %v2657_v38 = vpack.c.bf16 %v768_v33, %v760_v32  ;;  %v800_v57 = vld [vmem:[#allocation5 + $0xce8] sm:$0xff]  ;;  %v802_v59 = vld [vmem:[#allocation5 + $0xcf8] sm:$0xff] }
 0x169   : > { %2636 = vmatpush1.bf16.msra.mxu0 %v2635_v40  ;;  %v767_v40 = vld [vmem:[#allocation5 + $0xbe0] sm:$0xff]  ;;  %v2665_v61 = vpack.c.bf16 %v800_v57, %v792_v56  ;;  %v840_v28 = vld [vmem:[#allocation5 + $0xe28] sm:$0xff] }
 0x16a   : > { %2764 = vmatpush1.bf16.msra.mxu1 %v2763_v41  ;;  %2638 = vmatprep.subr.bf16.mxu0 %v2637_v42  ;;  %v761_v41 = vld [vmem:[#allocation5 + $0xbb0] sm:$0xff]  ;;  %v2785_v42 = vpack.c.bf16 %v770_v35, %v762_v34  ;;  %v2659_v48 = vpack.c.bf16 %v767_v40, %v759_v39  ;;  %v848_v29 = vld [vmem:[#allocation5 + $0xe68] sm:$0xff]  ;;  %v839_v35 = vld [vmem:[#allocation5 + $0xe20] sm:$0xff] }
 0x16b   : > { %2766 = vmatprep.subr.bf16.mxu1 %v2765_v46  ;;  %v778_v46 = vld [vmem:[#allocation5 + $0xc38] sm:$0xff]  ;;  %v2787_v49 = vpack.c.bf16 %v769_v43, %v761_v41  ;;  %v2677_v34 = vpack.c.bf16 %v848_v29, %v840_v28  ;;  %v849_v39 = vld [vmem:[#allocation5 + $0xe70] sm:$0xff]  ;;  %v856_v40 = vld [vmem:[#allocation5 + $0xea8] sm:$0xff] }
 0x16c   : > { %v864_v41 = vld [vmem:[#allocation5 + $0xee8] sm:$0xff]  ;;  %v866_v43 = vld [vmem:[#allocation5 + $0xef8] sm:$0xff] }
 0x16d   : > { %2640 = vmatpush1.bf16.msra.mxu0 %v2639_v52  ;;  %v783_v52 = vld [vmem:[#allocation5 + $0xc60] sm:$0xff] }
 0x16e   : > { %2768 = vmatpush1.bf16.msra.mxu1 %v2767_v53  ;;  %2642 = vmatprep.subr.bf16.mxu0 %v2641_v54  ;;  %v777_v53 = vld [vmem:[#allocation5 + $0xc30] sm:$0xff]  ;;  %v2789_v54 = vpack.c.bf16 %v786_v47, %v778_v46  ;;  %v2663_v60 = vpack.c.bf16 %v783_v52, %v775_v51  ;;  %v2681_v46 = vpack.c.bf16 %v864_v41, %v856_v40  ;;  %v855_v47 = vld [vmem:[#allocation5 + $0xea0] sm:$0xff]  ;;  %v872_v52 = vld [vmem:[#allocation5 + $0xf28] sm:$0xff] }
 0x16f   : > { %2770 = vmatprep.subr.bf16.mxu1 %v2769_v58  ;;  %v794_v58 = vld [vmem:[#allocation5 + $0xcb8] sm:$0xff]  ;;  %v2791_v16 = vpack.c.bf16 %v785_v55, %v777_v53  ;;  %v865_v51 = vld [vmem:[#allocation5 + $0xef0] sm:$0xff]  ;;  %v880_v53 = vld [vmem:[#allocation5 + $0xf68] sm:$0xff] }
 0x170   : > { %v882_v55 = vld [vmem:[#allocation5 + $0xf78] sm:$0xff]  ;;  %v1626_v40 = vld [vmem:[%s4104_s3 + $0x1a8] sm:$0xff] }
 0x171   : > { %2644 = vmatpush1.bf16.msra.mxu0 %v2643_v63  ;;  %v799_v63 = vld [vmem:[#allocation5 + $0xce0] sm:$0xff] }
 0x172   : > { %2772 = vmatpush1.bf16.msra.mxu1 %v2771_v24  ;;  %2646 = vmatprep.subr.bf16.mxu0 %v2645_v0  ;;  %v793_v24 = vld [vmem:[#allocation5 + $0xcb0] sm:$0xff]  ;;  %v2793_v0 = vpack.c.bf16 %v802_v59, %v794_v58  ;;  %v2667_v6 = vpack.c.bf16 %v799_v63, %v791_v62  ;;  %v2685_v58 = vpack.c.bf16 %v880_v53, %v872_v52  ;;  %v871_v59 = vld [vmem:[#allocation5 + $0xf20] sm:$0xff]  ;;  %v888_v63 = vld [vmem:[#allocation5 + $0xfa8] sm:$0xff] }
 0x173   : > { %2774 = vmatprep.subr.bf16.mxu1 %v2773_v4  ;;  %v810_v4 = vld [vmem:[#allocation5 + $0xd38] sm:$0xff]  ;;  %v2795_v7 = vpack.c.bf16 %v801_v1, %v793_v24  ;;  %v881_v62 = vld [vmem:[#allocation5 + $0xf70] sm:$0xff]  ;;  %v896_v24 = vld [vmem:[#allocation5 + $0xfe8] sm:$0xff] }
 0x174   : > { %v898_v1 = vld [vmem:[#allocation5 + $0xff8] sm:$0xff] }
 0x175   : > { %2648 = vmatpush1.bf16.msra.mxu0 %v2647_v10  ;;  %v815_v10 = vld [vmem:[#allocation5 + $0xd60] sm:$0xff]  ;;  %v1628_v52 = vld [vmem:[%s4104_s3 + $0x1b8] sm:$0xff] }
 0x176   : > { %2776 = vmatpush1.bf16.msra.mxu1 %v2775_v11  ;;  %2650 = vmatprep.subr.bf16.mxu0 %v2649_v12  ;;  %v809_v11 = vld [vmem:[#allocation5 + $0xd30] sm:$0xff]  ;;  %v2797_v12 = vpack.c.bf16 %v818_v5, %v810_v4  ;;  %v2671_v19 = vpack.c.bf16 %v815_v10, %v807_v9  ;;  %v2689_v4 = vpack.c.bf16 %v896_v24, %v888_v63  ;;  %v887_v5 = vld [vmem:[#allocation5 + $0xfa0] sm:$0xff]  ;;  %v1630_v63 = vld [vmem:[%s4104_s3 + $0x1c8] sm:$0xff] }
 0x177   : > { %2778 = vmatprep.subr.bf16.mxu1 %v2777_v17  ;;  %v826_v17 = vld [vmem:[#allocation5 + $0xdb8] sm:$0xff]  ;;  %v2799_v20 = vpack.c.bf16 %v817_v13, %v809_v11  ;;  %v897_v9 = vld [vmem:[#allocation5 + $0xff0] sm:$0xff]  ;;  %v1589_v10 = vld [vmem:[%s4104_s3 + $0x80] sm:$0xff] }
 0x178   : > { %v1590_v11 = vld [vmem:[%s4104_s3 + $0x88] sm:$0xff] }
 0x179   : > { %2652 = vmatpush1.bf16.msra.mxu0 %v2651_v23  ;;  %v831_v23 = vld [vmem:[#allocation5 + $0xde0] sm:$0xff]  ;;  %v1622_v13 = vld [vmem:[%s4104_s3 + $0x188] sm:$0xff] }
 0x17a   : > { %2780 = vmatpush1.bf16.msra.mxu1 %v2779_v25  ;;  %2654 = vmatprep.subr.bf16.mxu0 %v2653_v26  ;;  %v825_v25 = vld [vmem:[#allocation5 + $0xdb0] sm:$0xff]  ;;  %v2801_v26 = vpack.c.bf16 %v834_v18, %v826_v17  ;;  %v2675_v32 = vpack.c.bf16 %v831_v23, %v823_v22  ;;  %v2821_v17 = vpack.c.bf16 %v1590_v11, %v1589_v10  ;;  %v1573_v18 = vld [vmem:[%s4104_s3] sm:$0xff]  ;;  %v1606_v22 = vld [vmem:[%s4104_s3 + $0x108] sm:$0xff] }
 0x17b   : > { %2782 = vmatprep.subr.bf16.mxu1 %v2781_v30  ;;  %v842_v30 = vld [vmem:[#allocation5 + $0xe38] sm:$0xff]  ;;  %v2803_v33 = vpack.c.bf16 %v833_v27, %v825_v25  ;;  %v1591_v23 = vld [vmem:[%s4104_s3 + $0x90] sm:$0xff] }
 0x17c   : > { %v1592_v25 = vld [vmem:[%s4104_s3 + $0x98] sm:$0xff] }
 0x17d   : > { %2656 = vmatpush1.bf16.msra.mxu0 %v2655_v36  ;;  %v847_v36 = vld [vmem:[#allocation5 + $0xe60] sm:$0xff]  ;;  %v1624_v27 = vld [vmem:[%s4104_s3 + $0x198] sm:$0xff] }
 0x17e   : > { %2784 = vmatpush1.bf16.msra.mxu1 %v2783_v37  ;;  %2658 = vmatprep.subr.bf16.mxu0 %v2657_v38  ;;  %v841_v37 = vld [vmem:[#allocation5 + $0xe30] sm:$0xff]  ;;  %v2805_v38 = vpack.c.bf16 %v850_v31, %v842_v30  ;;  %v2679_v44 = vpack.c.bf16 %v847_v36, %v839_v35  ;;  %v2825_v30 = vpack.c.bf16 %v1592_v25, %v1591_v23  ;;  %v1608_v35 = vld [vmem:[%s4104_s3 + $0x118] sm:$0xff]  ;;  %v1593_v36 = vld [vmem:[%s4104_s3 + $0xa0] sm:$0xff] }
 0x17f   : > { %2786 = vmatprep.subr.bf16.mxu1 %v2785_v42  ;;  %v858_v42 = vld [vmem:[#allocation5 + $0xeb8] sm:$0xff]  ;;  %v2807_v45 = vpack.c.bf16 %v849_v39, %v841_v37  ;;  %v1575_v31 = vld [vmem:[%s4104_s3 + $0x10] sm:$0xff]  ;;  %v1594_v37 = vld [vmem:[%s4104_s3 + $0xa8] sm:$0xff] }
 0x180   : > { %v1625_v39 = vld [vmem:[%s4104_s3 + $0x1a0] sm:$0xff]  ;;  %v1632_v10 = vld [vmem:[%s4104_s3 + $0x1d8] sm:$0xff]  ;;  %v1634_v23 = vld [vmem:[%s4104_s3 + $0x1e8] sm:$0xff] }
 0x181   : > { %2660 = vmatpush1.bf16.msra.mxu0 %v2659_v48  ;;  %v863_v48 = vld [vmem:[#allocation5 + $0xee0] sm:$0xff] }
 0x182   : > { %2788 = vmatpush1.bf16.msra.mxu1 %v2787_v49  ;;  %2662 = vmatprep.subr.bf16.mxu0 %v2661_v50  ;;  %v857_v49 = vld [vmem:[#allocation5 + $0xeb0] sm:$0xff]  ;;  %v2809_v50 = vpack.c.bf16 %v866_v43, %v858_v42  ;;  %v2683_v56 = vpack.c.bf16 %v863_v48, %v855_v47  ;;  %v2829_v43 = vpack.c.bf16 %v1594_v37, %v1593_v36  ;;  %v1610_v48 = vld [vmem:[%s4104_s3 + $0x128] sm:$0xff]  ;;  %v1636_v36 = vld [vmem:[%s4104_s3 + $0x1f8] sm:$0xff] }
 0x183   : > { %2790 = vmatprep.subr.bf16.mxu1 %v2789_v54  ;;  %v874_v54 = vld [vmem:[#allocation5 + $0xf38] sm:$0xff]  ;;  %v2811_v57 = vpack.c.bf16 %v865_v51, %v857_v49  ;;  %v2861_v47 = vpack.c.bf16 %v1626_v40, %v1625_v39  ;;  %v1595_v49 = vld [vmem:[%s4104_s3 + $0xb0] sm:$0xff] }
 0x184   : > { %v1627_v51 = vld [vmem:[%s4104_s3 + $0x1b0] sm:$0xff] }
 0x185   : > { %2664 = vmatpush1.bf16.msra.mxu0 %v2663_v60  ;;  %v879_v60 = vld [vmem:[#allocation5 + $0xf60] sm:$0xff]  ;;  %v1587_v40 = vld [vmem:[%s4104_s3 + $0x70] sm:$0xff] }
 0x186   : > { %2792 = vmatpush1.bf16.msra.mxu1 %v2791_v16  ;;  %2666 = vmatprep.subr.bf16.mxu0 %v2665_v61  ;;  %v873_v16 = vld [vmem:[#allocation5 + $0xf30] sm:$0xff]  ;;  %v2813_v61 = vpack.c.bf16 %v882_v55, %v874_v54  ;;  %v2687_v2 = vpack.c.bf16 %v879_v60, %v871_v59  ;;  %v2865_v59 = vpack.c.bf16 %v1628_v52, %v1627_v51  ;;  %v1612_v60 = vld [vmem:[%s4104_s3 + $0x138] sm:$0xff] }
 0x187   : > { %2794 = vmatprep.subr.bf16.mxu1 %v2793_v0  ;;  %v890_v0 = vld [vmem:[#allocation5 + $0xfb8] sm:$0xff]  ;;  %v2815_v3 = vpack.c.bf16 %v881_v62, %v873_v16  ;;  %v1597_v16 = vld [vmem:[%s4104_s3 + $0xc0] sm:$0xff] }
 0x188   : > { %v1629_v62 = vld [vmem:[%s4104_s3 + $0x1c0] sm:$0xff] }
 0x189   : > { %2668 = vmatpush1.bf16.msra.mxu0 %v2667_v6  ;;  %v895_v6 = vld [vmem:[#allocation5 + $0xfe0] sm:$0xff] }
 0x18a   : > { %2796 = vmatpush1.bf16.msra.mxu1 %v2795_v7  ;;  %2670 = vmatprep.subr.bf16.mxu0 %v2669_v8  ;;  %v889_v7 = vld [vmem:[#allocation5 + $0xfb0] sm:$0xff]  ;;  %v2817_v8 = vpack.c.bf16 %v898_v1, %v890_v0  ;;  %v2691_v14 = vpack.c.bf16 %v895_v6, %v887_v5  ;;  %v2869_v5 = vpack.c.bf16 %v1630_v63, %v1629_v62  ;;  %v1614_v6 = vld [vmem:[%s4104_s3 + $0x148] sm:$0xff] }
 0x18b   : > { %2798 = vmatprep.subr.bf16.mxu1 %v2797_v12  ;;  %v1621_v12 = vld [vmem:[%s4104_s3 + $0x180] sm:$0xff]  ;;  %v2819_v15 = vpack.c.bf16 %v897_v9, %v889_v7  ;;  %v1599_v7 = vld [vmem:[%s4104_s3 + $0xd0] sm:$0xff] }
 0x18c   : > { %v1631_v9 = vld [vmem:[%s4104_s3 + $0x1d0] sm:$0xff] }
 0x18d   : > { %2672 = vmatpush1.bf16.msra.mxu0 %v2671_v19  ;;  %v1574_v19 = vld [vmem:[%s4104_s3 + $0x8] sm:$0xff] }
 0x18e   : > { %2800 = vmatpush1.bf16.msra.mxu1 %v2799_v20  ;;  %2674 = vmatprep.subr.bf16.mxu0 %v2673_v21  ;;  %v1605_v20 = vld [vmem:[%s4104_s3 + $0x100] sm:$0xff]  ;;  %v2853_v21 = vpack.c.bf16 %v1622_v13, %v1621_v12  ;;  %v2823_v28 = vpack.c.bf16 %v1574_v19, %v1573_v18  ;;  %v2873_v18 = vpack.c.bf16 %v1632_v10, %v1631_v9  ;;  %v1616_v19 = vld [vmem:[%s4104_s3 + $0x158] sm:$0xff] }
 0x18f   : > { %2802 = vmatprep.subr.bf16.mxu1 %v2801_v26  ;;  %v1623_v26 = vld [vmem:[%s4104_s3 + $0x190] sm:$0xff]  ;;  %v2855_v29 = vpack.c.bf16 %v1606_v22, %v1605_v20  ;;  %v1601_v20 = vld [vmem:[%s4104_s3 + $0xe0] sm:$0xff] }
 0x190   : > { %v1633_v22 = vld [vmem:[%s4104_s3 + $0x1e0] sm:$0xff] }
 0x191   : > { %2676 = vmatpush1.bf16.msra.mxu0 %v2675_v32  ;;  %v1576_v32 = vld [vmem:[%s4104_s3 + $0x18] sm:$0xff] }
 0x192   : > { %2804 = vmatpush1.bf16.msra.mxu1 %v2803_v33  ;;  %2678 = vmatprep.subr.bf16.mxu0 %v2677_v34  ;;  %v1607_v33 = vld [vmem:[%s4104_s3 + $0x110] sm:$0xff]  ;;  %v2857_v34 = vpack.c.bf16 %v1624_v27, %v1623_v26  ;;  %v2827_v41 = vpack.c.bf16 %v1576_v32, %v1575_v31  ;;  %v2877_v31 = vpack.c.bf16 %v1634_v23, %v1633_v22  ;;  %v1618_v32 = vld [vmem:[%s4104_s3 + $0x168] sm:$0xff] }
 0x193   : > { %2806 = vmatprep.subr.bf16.mxu1 %v2805_v38  ;;  %v3060_v38 = vld [vmem:[%s3586_s25 + $0x10] sm:$0xff]  ;;  %v2859_v42 = vpack.c.bf16 %v1608_v35, %v1607_v33  ;;  %s3203_s25 = scalar_lea.vmem %s2004_s10, 16 }
 0x194   : > { %v1603_v33 = vld [vmem:[%s4104_s3 + $0xf0] sm:$0xff]  ;;  %p3204_p6 = scmp.ne.s32.totalorder %s2004_s10, %s3203_s25  ;;  %p3211_p3 = scmp.lt.s32.totalorder %s3209_s22, %s3203_s25 }
 0x195   : > { %2680 = vmatpush1.bf16.msra.mxu0 %v2679_v44  ;;  %v1577_v44 = vld [vmem:[%s4104_s3 + $0x20] sm:$0xff]  ;;  %v1635_v35 = vld [vmem:[%s4104_s3 + $0x1f0] sm:$0xff] }
 0x196   : > { %2808 = vmatpush1.bf16.msra.mxu1 %v2807_v45  ;;  %2682 = vmatprep.subr.bf16.mxu0 %v2681_v46  ;;  %v1578_v45 = vld [vmem:[%s4104_s3 + $0x28] sm:$0xff]  ;;  %v1609_v46 = vld [vmem:[%s4104_s3 + $0x120] sm:$0xff]  ;;  %p3205_p7 = pnand %p3204_p6, %p4129_p5  ;;  %p3212_p13 = por %p3211_p3, %p3210_p12 }
 0x197   : > { %2810 = vmatprep.subr.bf16.mxu1 %v2809_v50  ;;  %v1596_v50 = vld [vmem:[%s4104_s3 + $0xb8] sm:$0xff]  ;;  %v2831_v53 = vpack.c.bf16 %v1578_v45, %v1577_v44  ;;  %v2863_v54 = vpack.c.bf16 %v1610_v48, %v1609_v46  ;;  %v1796_v45 = vld [vmem:[%s4106_s5 + $0x80] sm:$0xff]  ;;  %v1797_v46 = vld [vmem:[%s4106_s5 + $0x88] sm:$0xff] }
 0x198   : > { %v2833_v55 = vpack.c.bf16 %v1596_v50, %v1595_v49  ;;  %v1620_v44 = vld [vmem:[%s4104_s3 + $0x178] sm:$0xff]  ;;  %v1829_v48 = vld [vmem:[%s4106_s5 + $0x188] sm:$0xff]  ;;  %v2885_v51 = vpack.c.bf16 %v1797_v46, %v1796_v45  ;;  %p3206_p9 = pneg %p3205_p7 }
 0x199   : > { %2684 = vmatpush1.bf16.msra.mxu0 %v2683_v56  ;;  %v1579_v56 = vld [vmem:[%s4104_s3 + $0x30] sm:$0xff] }
 0x19a   : > { %2812 = vmatpush1.bf16.msra.mxu1 %v2811_v57  ;;  %2686 = vmatprep.subr.bf16.mxu0 %v2685_v58  ;;  %v1580_v57 = vld [vmem:[%s4104_s3 + $0x38] sm:$0xff]  ;;  %v1611_v58 = vld [vmem:[%s4104_s3 + $0x130] sm:$0xff]  ;;  %p3213_p0 = pnand %p3212_p13, %p3206_p9 }
 0x19b   : > { %2814 = vmatprep.subr.bf16.mxu1 %v2813_v61  ;;  %v1598_v61 = vld [vmem:[%s4104_s3 + $0xc8] sm:$0xff]  ;;  %v2835_v24 = vpack.c.bf16 %v1580_v57, %v1579_v56  ;;  %v2867_v0 = vpack.c.bf16 %v1612_v60, %v1611_v58  ;;  %v3825_v56 = vld [vmem:[#allocation7] sm:$0xff] }
 0x19c   : > { %v2837_v1 = vpack.c.bf16 %v1598_v61, %v1597_v16 }
 0x19d   : > { %2688 = vmatpush1.bf16.msra.mxu0 %v2687_v2  ;;  %v1581_v2 = vld [vmem:[%s4104_s3 + $0x40] sm:$0xff] }
 0x19e   : > { %2816 = vmatpush1.bf16.msra.mxu1 %v2815_v3  ;;  %2690 = vmatprep.subr.bf16.mxu0 %v2689_v4  ;;  %v1582_v3 = vld [vmem:[%s4104_s3 + $0x48] sm:$0xff]  ;;  %v1613_v4 = vld [vmem:[%s4104_s3 + $0x140] sm:$0xff] }
 0x19f   : > { %2818 = vmatprep.subr.bf16.mxu1 %v2817_v8  ;;  %v1600_v8 = vld [vmem:[%s4104_s3 + $0xd8] sm:$0xff]  ;;  %v2839_v11 = vpack.c.bf16 %v1582_v3, %v1581_v2  ;;  %v2871_v12 = vpack.c.bf16 %v1614_v6, %v1613_v4 }
 0x1a0   : > { %v2841_v13 = vpack.c.bf16 %v1600_v8, %v1599_v7 }
 0x1a1   : > { %2692 = vmatpush1.bf16.msra.mxu0 %v2691_v14  ;;  %v1583_v14 = vld [vmem:[%s4104_s3 + $0x50] sm:$0xff] }
 0x1a2   : > { %2820 = vmatpush1.bf16.msra.mxu1 %v2819_v15  ;;  %2822 = vmatprep.subr.bf16.mxu0 %v2821_v17  ;;  %v1584_v15 = vld [vmem:[%s4104_s3 + $0x58] sm:$0xff]  ;;  %v1615_v17 = vld [vmem:[%s4104_s3 + $0x150] sm:$0xff] }
 0x1a3   : > { %2854 = vmatprep.subr.bf16.mxu1 %v2853_v21  ;;  %v1602_v21 = vld [vmem:[%s4104_s3 + $0xe8] sm:$0xff]  ;;  %v2843_v25 = vpack.c.bf16 %v1584_v15, %v1583_v14  ;;  %v2875_v26 = vpack.c.bf16 %v1616_v19, %v1615_v17 }
 0x1a4   : > { %1361 = vmatmul.mubr.f32.vlgmr.msra.gmra.mrb[2].mxu0 %v3060_v38  ;;  %v2845_v27 = vpack.c.bf16 %v1602_v21, %v1601_v20 }
 0x1a5   : > { %1503 = vmatmul.mubr.f32.vlgmr.msra.gmra.mrb[2].mxu1 %v3060_v38  ;;  %2824 = vmatpush3.bf16.msra.mxu0 %v2823_v28  ;;  %v1585_v28 = vld [vmem:[%s4104_s3 + $0x60] sm:$0xff] }
 0x1a6   : > { %2856 = vmatpush3.bf16.msra.mxu1 %v2855_v29  ;;  %2826 = vmatprep.subr.bf16.mxu0 %v2825_v30  ;;  %v1586_v29 = vld [vmem:[%s4104_s3 + $0x68] sm:$0xff]  ;;  %v1617_v30 = vld [vmem:[%s4104_s3 + $0x160] sm:$0xff] }
 0x1a7   : > { %2858 = vmatprep.subr.bf16.mxu1 %v2857_v34  ;;  %v1604_v34 = vld [vmem:[%s4104_s3 + $0xf8] sm:$0xff]  ;;  %v2847_v37 = vpack.c.bf16 %v1586_v29, %v1585_v28  ;;  %v2879_v38 = vpack.c.bf16 %v1618_v32, %v1617_v30 }
 0x1a8   : > { %v2849_v39 = vpack.c.bf16 %v1604_v34, %v1603_v33  ;;  %v1780_v33 = vld [vmem:[%s4106_s5] sm:$0xff]  ;;  %v1781_v34 = vld [vmem:[%s4106_s5 + $0x8] sm:$0xff] }
 0x1a9   : > { %2828 = vmatpush3.bf16.msra.mxu0 %v2827_v41  ;;  %v1588_v41 = vld [vmem:[%s4104_s3 + $0x78] sm:$0xff]  ;;  %v2887_v45 = vpack.c.bf16 %v1781_v34, %v1780_v33 }
 0x1aa   : > { %2860 = vmatpush3.bf16.msra.mxu1 %v2859_v42  ;;  %2830 = vmatprep.subr.bf16.mxu0 %v2829_v43  ;;  %v1619_v42 = vld [vmem:[%s4104_s3 + $0x170] sm:$0xff]  ;;  %v2881_v43 = vpack.c.bf16 %v1636_v36, %v1635_v35  ;;  %v2851_v49 = vpack.c.bf16 %v1588_v41, %v1587_v40  ;;  %v1812_v35 = vld [vmem:[%s4106_s5 + $0x100] sm:$0xff]  ;;  %v1799_v40 = vld [vmem:[%s4106_s5 + $0x98] sm:$0xff] }
 0x1ab   : > { %2862 = vmatprep.subr.bf16.mxu1 %v2861_v47  ;;  %v1828_v47 = vld [vmem:[%s4106_s5 + $0x180] sm:$0xff]  ;;  %v2883_v50 = vpack.c.bf16 %v1620_v44, %v1619_v42  ;;  %v1830_v42 = vld [vmem:[%s4106_s5 + $0x190] sm:$0xff]  ;;  %v1839_v33 = vld [vmem:[%s4106_s5 + $0x1d8] sm:$0xff] }
 0x1ac   : > { %v2917_v52 = vpack.c.bf16 %v1829_v48, %v1828_v47 }
 0x1ad   : > { %2832 = vmatpush3.bf16.msra.mxu0 %v2831_v53  ;;  %v901_v53 = vlaneseq }
 0x1ae   : > { %2864 = vmatpush3.bf16.msra.mxu1 %v2863_v54  ;;  %2834 = vmatprep.subr.bf16.mxu0 %v2833_v55 }
 0x1af   : > { %2866 = vmatprep.subr.bf16.mxu1 %v2865_v59  ;;  %v3822_v54 = vshrl.u32 %v901_v53, 7 }
 0x1b1   : > { %2836 = vmatpush3.bf16.msra.mxu0 %v2835_v24  ;;  %v903_v55 = vsub.s32 0, %v3822_v54  ;;  %v911_v57 = vsub.s32 2, %v3822_v54  ;;  %v907_v58 = vsub.s32 1, %v3822_v54  ;;  %v915_v59 = vsub.s32 3, %v3822_v54 }
 0x1b2   : > { %2868 = vmatpush3.bf16.msra.mxu1 %v2867_v0  ;;  %2838 = vmatprep.subr.bf16.mxu0 %v2837_v1 }
 0x1b3   : > { %2870 = vmatprep.subr.bf16.mxu1 %v2869_v5  ;;  %v904_v60 = vrot.slane %v3825_v56, %v903_v55  ;;  %v912_v16 = vrot.slane %v3825_v56, %v911_v57  ;;  %v908_v61 = vrot.slane %v3825_v56, %v907_v58  ;;  %v916_v62 = vrot.slane %v3825_v56, %v915_v59  ;;  %v1815_v57 = vld [vmem:[%s4106_s5 + $0x118] sm:$0xff]  ;;  %v1800_v58 = vld [vmem:[%s4106_s5 + $0xa0] sm:$0xff]  ;;  %v1801_v59 = vld [vmem:[%s4106_s5 + $0xa8] sm:$0xff] }
 0x1b5   : > { %2840 = vmatpush3.bf16.msra.mxu0 %v2839_v11 }
 0x1b6   : > { %2872 = vmatpush3.bf16.msra.mxu1 %v2871_v12  ;;  %2842 = vmatprep.subr.bf16.mxu0 %v2841_v13 }
 0x1b7   : > { %2874 = vmatprep.subr.bf16.mxu1 %v2873_v18 }
 0x1b9   : > { %2844 = vmatpush3.bf16.msra.mxu0 %v2843_v25 }
 0x1ba   : > { %2876 = vmatpush3.bf16.msra.mxu1 %v2875_v26  ;;  %2846 = vmatprep.subr.bf16.mxu0 %v2845_v27 }
 0x1bb   : > { %2878 = vmatprep.subr.bf16.mxu1 %v2877_v31 }
 0x1bd   : > { %2848 = vmatpush3.bf16.msra.mxu0 %v2847_v37 }
 0x1be   : > { %2880 = vmatpush3.bf16.msra.mxu1 %v2879_v38  ;;  %2850 = vmatprep.subr.bf16.mxu0 %v2849_v39  ;;  %v1813_v38 = vld [vmem:[%s4106_s5 + $0x108] sm:$0xff]  ;;  %v1798_v39 = vld [vmem:[%s4106_s5 + $0x90] sm:$0xff] }
 0x1bf   : > { %2882 = vmatprep.subr.bf16.mxu1 %v2881_v43  ;;  %v1831_v43 = vld [vmem:[%s4106_s5 + $0x198] sm:$0xff]  ;;  %v2919_v48 = vpack.c.bf16 %v1813_v38, %v1812_v35 }
 0x1c0   : > { %v2921_v55 = vpack.c.bf16 %v1831_v43, %v1830_v42  ;;  %v1791_v38 = vld [vmem:[%s4106_s5 + $0x58] sm:$0xff]  ;;  %v1808_v42 = vld [vmem:[%s4106_s5 + $0xe0] sm:$0xff]  ;;  %v1809_v43 = vld [vmem:[%s4106_s5 + $0xe8] sm:$0xff] }
 0x1c1   : > { %2852 = vmatpush3.bf16.msra.mxu0 %v2851_v49  ;;  %v2889_v49 = vpack.c.bf16 %v1799_v40, %v1798_v39  ;;  %v1822_v39 = vld [vmem:[%s4106_s5 + $0x150] sm:$0xff] }
 0x1c2   : > { %2884 = vmatpush3.bf16.msra.mxu1 %v2883_v50  ;;  %2886 = vmatprep.subr.bf16.mxu0 %v2885_v51  ;;  %v1782_v50 = vld [vmem:[%s4106_s5 + $0x10] sm:$0xff]  ;;  %v1783_v51 = vld [vmem:[%s4106_s5 + $0x18] sm:$0xff] }
 0x1c3   : > { %2918 = vmatprep.subr.bf16.mxu1 %v2917_v52  ;;  %v1814_v52 = vld [vmem:[%s4106_s5 + $0x110] sm:$0xff] }
 0x1f7   : > { %v1078_v63 = vpop.f32.mrb[0].mxu0 }
 0x1f8   : > { %v2949_v24 = vadd.f32 %v1078_v63, %v904_v60  ;;  %v1220_v0 = vpop.f32.mrb[0].mxu1  ;;  %v1080_v1 = vpop.f32.mrb[1].mxu0  ;;  %v1832_v60 = vld [vmem:[%s4106_s5 + $0x1a0] sm:$0xff]  ;;  %v2893_v63 = vpack.c.bf16 %v1801_v59, %v1800_v58  ;;  %v1842_v58 = vld [vmem:[%s4106_s5 + $0x1f0] sm:$0xff]  ;;  %v1843_v59 = vld [vmem:[%s4106_s5 + $0x1f8] sm:$0xff] }
 0x1f9   : > { %v2951_v2 = vadd.f32 %v1220_v0, %v912_v16  ;;  %v2950_v3 = vadd.f32 %v1080_v1, %v908_v61  ;;  %v1222_v4 = vpop.f32.mrb[1].mxu1  ;;  %v1833_v16 = vld [vmem:[%s4106_s5 + $0x1a8] sm:$0xff]  ;;  %v2891_v61 = vpack.c.bf16 %v1783_v51, %v1782_v50  ;;  %v1816_v1 = vld [vmem:[%s4106_s5 + $0x120] sm:$0xff] }
 0x1fa   : > { %v1509_v5 = vmax.f32 %v2949_v24, 0.0  ;;  %v2952_v6 = vadd.f32 %v1222_v4, %v916_v62  ;;  %v2923_v62 = vpack.c.bf16 %v1815_v57, %v1814_v52  ;;  %v1784_v24 = vld [vmem:[%s4106_s5 + $0x20] sm:$0xff]  ;;  %v1785_v0 = vld [vmem:[%s4106_s5 + $0x28] sm:$0xff]  ;;  %v1802_v4 = vld [vmem:[%s4106_s5 + $0xb0] sm:$0xff] }
 0x1fb   : > { %v1511_v7 = vmax.f32 %v2951_v2, 0.0  ;;  %v1510_v8 = vmax.f32 %v2950_v3, 0.0  ;;  %v2925_v2 = vpack.c.bf16 %v1833_v16, %v1832_v60  ;;  %v1817_v3 = vld [vmem:[%s4106_s5 + $0x128] sm:$0xff]  ;;  %v1824_v51 = vld [vmem:[%s4106_s5 + $0x160] sm:$0xff]  ;;  %v1811_v57 = vld [vmem:[%s4106_s5 + $0xf8] sm:$0xff] }
 0x1fc   : > { %v1517_v9 = vrot.slane %v1509_v5, 4  ;;  %v1512_v10 = vmax.f32 %v2952_v6, 0.0  ;;  %v1834_v6 = vld [vmem:[%s4106_s5 + $0x1b0] sm:$0xff]  ;;  %v1793_v50 = vld [vmem:[%s4106_s5 + $0x68] sm:$0xff] }
 0x1fd   : > { %v1529_v11 = vrot.slane %v1511_v7, 4  ;;  %v1523_v12 = vrot.slane %v1510_v8, 4 }
 0x1fe   : > { %v1518_v13 = vadd.f32 %v1517_v9, %v1509_v5  ;;  %v1535_v14 = vrot.slane %v1512_v10, 4  ;;  %v1803_v5 = vld [vmem:[%s4106_s5 + $0xb8] sm:$0xff]  ;;  %v2927_v9 = vpack.c.bf16 %v1817_v3, %v1816_v1 }
 0x1ff   : > { %v1530_v15 = vadd.f32 %v1529_v11, %v1511_v7  ;;  %v1524_v17 = vadd.f32 %v1523_v12, %v1510_v8  ;;  %v1835_v7 = vld [vmem:[%s4106_s5 + $0x1b8] sm:$0xff]  ;;  %v2895_v8 = vpack.c.bf16 %v1785_v0, %v1784_v24  ;;  %v1786_v11 = vld [vmem:[%s4106_s5 + $0x30] sm:$0xff]  ;;  %v2945_v24 = vpack.c.bf16 %v1843_v59, %v1842_v58 }
 0x200   : > { %v1519_v18 = vrot.slane %v1518_v13, 2  ;;  %v1536_v19 = vadd.f32 %v1535_v14, %v1512_v10  ;;  %v2897_v10 = vpack.c.bf16 %v1803_v5, %v1802_v4  ;;  %v1787_v12 = vld [vmem:[%s4106_s5 + $0x38] sm:$0xff]  ;;  %v2929_v14 = vpack.c.bf16 %v1835_v7, %v1834_v6  ;;  %v1826_v0 = vld [vmem:[%s4106_s5 + $0x170] sm:$0xff] }
 0x201   : > { %v1531_v20 = vrot.slane %v1530_v15, 2  ;;  %v1525_v21 = vrot.slane %v1524_v17, 2  ;;  %v1827_v1 = vld [vmem:[%s4106_s5 + $0x178] sm:$0xff]  ;;  %v919_v4 = vsub.s32 4, %v3822_v54  ;;  %v927_v5 = vsub.s32 6, %v3822_v54 }
 0x202   : > { %v1520_v22 = vadd.f32 %v1519_v18, %v1518_v13  ;;  %v1537_v23 = vrot.slane %v1536_v19, 2  ;;  %v1818_v13 = vld [vmem:[%s4106_s5 + $0x130] sm:$0xff]  ;;  %v1805_v18 = vld [vmem:[%s4106_s5 + $0xc8] sm:$0xff]  ;;  %v2947_v3 = vpack.c.bf16 %v1827_v1, %v1826_v0  ;;  %v923_v6 = vsub.s32 5, %v3822_v54 }
 0x203   : > { %v1532_v25 = vadd.f32 %v1531_v20, %v1530_v15  ;;  %v1526_v26 = vadd.f32 %v1525_v21, %v1524_v17  ;;  %v1819_v15 = vld [vmem:[%s4106_s5 + $0x138] sm:$0xff]  ;;  %v1804_v17 = vld [vmem:[%s4106_s5 + $0xc0] sm:$0xff]  ;;  %v1837_v20 = vld [vmem:[%s4106_s5 + $0x1c8] sm:$0xff]  ;;  %v2899_v21 = vpack.c.bf16 %v1787_v12, %v1786_v11  ;;  %v931_v7 = vsub.s32 7, %v3822_v54 }
 0x204   : > { %v1521_v27 = vrot.slane %v1520_v22, 1  ;;  %v1538_v28 = vadd.f32 %v1537_v23, %v1536_v19  ;;  %v1836_v19 = vld [vmem:[%s4106_s5 + $0x1c0] sm:$0xff]  ;;  %v2901_v23 = vpack.c.bf16 %v1805_v18, %v1804_v17 }
 0x205   : > { %v1533_v29 = vrot.slane %v1532_v25, 1  ;;  %v1527_v30 = vrot.slane %v1526_v26, 1  ;;  %v932_v11 = vrot.slane %v3825_v56, %v931_v7 }
 0x206   : > { %v1522_v31 = vadd.f32 %v1521_v27, %v1520_v22  ;;  %v1539_v32 = vrot.slane %v1538_v28, 1  ;;  %v2931_v22 = vpack.c.bf16 %v1819_v15, %v1818_v13  ;;  %v1820_v27 = vld [vmem:[%s4106_s5 + $0x140] sm:$0xff] }
 0x207   : > { %v1534_v36 = vadd.f32 %v1533_v29, %v1532_v25  ;;  %v1528_v37 = vadd.f32 %v1527_v30, %v1526_v26  ;;  %v1788_v25 = vld [vmem:[%s4106_s5 + $0x40] sm:$0xff]  ;;  %v1789_v26 = vld [vmem:[%s4106_s5 + $0x48] sm:$0xff]  ;;  %v1806_v30 = vld [vmem:[%s4106_s5 + $0xd0] sm:$0xff] }
 0x208   : > { %v1540_v41 = vadd.f32 %v1539_v32, %v1538_v28  ;;  %v1565_v47 = vmul.f32 0.125, %v1522_v31  ;;  %v2933_v28 = vpack.c.bf16 %v1837_v20, %v1836_v19  ;;  %v1821_v29 = vld [vmem:[%s4106_s5 + $0x148] sm:$0xff]  ;;  %v1807_v31 = vld [vmem:[%s4106_s5 + $0xd8] sm:$0xff]  ;;  %v1838_v32 = vld [vmem:[%s4106_s5 + $0x1d0] sm:$0xff]  ;;  %v2903_v34 = vpack.c.bf16 %v1789_v26, %v1788_v25 }
 0x209   : > { %v1566_v44 = vmul.f32 0.125, %v1528_v37  ;;  %v1567_v53 = vmul.f32 0.125, %v1534_v36  ;;  %v2935_v35 = vpack.c.bf16 %v1821_v29, %v1820_v27  ;;  %v2905_v36 = vpack.c.bf16 %v1807_v31, %v1806_v30  ;;  %v1790_v37 = vld [vmem:[%s4106_s5 + $0x50] sm:$0xff] }
 0x20a   : > { %v1568_v46 = vmul.f32 0.125, %v1540_v41  ;;  %v2937_v40 = vpack.c.bf16 %v1839_v33, %v1838_v32  ;;  %v1823_v41 = vld [vmem:[%s4106_s5 + $0x158] sm:$0xff] }
 0x20b   : > { %1702 = vmatprep.mubr.f32.mxu0 %v1566_v44  ;;  %v1840_v44 = vld [vmem:[%s4106_s5 + $0x1e0] sm:$0xff] }
 0x20c   : > { %1772 = vmatprep.mubr.f32.mxu1 %v1568_v46  ;;  %1703 = vmatmul.mubr.f32.vlgmr.msra.gmra.mrb[4].mxu0 %v1565_v47  ;;  %v2907_v46 = vpack.c.bf16 %v1791_v38, %v1790_v37  ;;  %v2939_v47 = vpack.c.bf16 %v1823_v41, %v1822_v39 }
 0x20d   : > { %1773 = vmatmul.mubr.f32.vlgmr.msra.gmra.mrb[4].mxu1 %v1567_v53  ;;  %2888 = vmatpush3.bf16.msra.mxu0 %v2887_v45  ;;  %v1841_v45 = vld [vmem:[%s4106_s5 + $0x1e8] sm:$0xff] }
 0x20e   : > { %2920 = vmatpush3.bf16.msra.mxu1 %v2919_v48  ;;  %2890 = vmatprep.subr.bf16.mxu0 %v2889_v49  ;;  %v2909_v48 = vpack.c.bf16 %v1809_v43, %v1808_v42  ;;  %v1792_v49 = vld [vmem:[%s4106_s5 + $0x60] sm:$0xff]  ;;  %v2941_v52 = vpack.c.bf16 %v1841_v45, %v1840_v44  ;;  %v1825_v53 = vld [vmem:[%s4106_s5 + $0x168] sm:$0xff] }
 0x20f   : > { %2922 = vmatprep.subr.bf16.mxu1 %v2921_v55  ;;  %v1810_v55 = vld [vmem:[%s4106_s5 + $0xf0] sm:$0xff]  ;;  %v2911_v60 = vpack.c.bf16 %v1793_v50, %v1792_v49  ;;  %v2943_v16 = vpack.c.bf16 %v1825_v53, %v1824_v51 }
 0x211   : > { %2892 = vmatpush3.bf16.msra.mxu0 %v2891_v61  ;;  %v2913_v61 = vpack.c.bf16 %v1811_v57, %v1810_v55  ;;  %v1637_v55 = vld [vmem:[#allocation8] sm:$0x1] }
 0x212   : > { %2924 = vmatpush3.bf16.msra.mxu1 %v2923_v62  ;;  %2894 = vmatprep.subr.bf16.mxu0 %v2893_v63  ;;  %v1794_v62 = vld [vmem:[%s4106_s5 + $0x70] sm:$0xff]  ;;  %v1795_v63 = vld [vmem:[%s4106_s5 + $0x78] sm:$0xff] }
 0x213   : > { %2926 = vmatprep.subr.bf16.mxu1 %v2925_v2  ;;  %v2915_v2 = vpack.c.bf16 %v1795_v63, %v1794_v62 }
 0x215   : > { %2896 = vmatpush3.bf16.msra.mxu0 %v2895_v8  ;;  %v920_v8 = vrot.slane %v3825_v56, %v919_v4 }
 0x216   : > { %2928 = vmatpush3.bf16.msra.mxu1 %v2927_v9  ;;  %2898 = vmatprep.subr.bf16.mxu0 %v2897_v10  ;;  %v928_v9 = vrot.slane %v3825_v56, %v927_v5  ;;  %v924_v10 = vrot.slane %v3825_v56, %v923_v6 }
 0x217   : > { %2930 = vmatprep.subr.bf16.mxu1 %v2929_v14 }
 0x219   : > { %2900 = vmatpush3.bf16.msra.mxu0 %v2899_v21 }
 0x21a   : > { %2932 = vmatpush3.bf16.msra.mxu1 %v2931_v22  ;;  %2902 = vmatprep.subr.bf16.mxu0 %v2901_v23 }
 0x21b   : > { %2934 = vmatprep.subr.bf16.mxu1 %v2933_v28 }
 0x21d   : > { %2904 = vmatpush3.bf16.msra.mxu0 %v2903_v34 }
 0x21e   : > { %2936 = vmatpush3.bf16.msra.mxu1 %v2935_v35  ;;  %2906 = vmatprep.subr.bf16.mxu0 %v2905_v36 }
 0x21f   : > { %2938 = vmatprep.subr.bf16.mxu1 %v2937_v40 }
 0x221   : > { %2908 = vmatpush3.bf16.msra.mxu0 %v2907_v46 }
 0x222   : > { %2940 = vmatpush3.bf16.msra.mxu1 %v2939_v47  ;;  %2910 = vmatprep.subr.bf16.mxu0 %v2909_v48 }
 0x223   : > { %2942 = vmatprep.subr.bf16.mxu1 %v2941_v52 }
 0x225   : > { %2912 = vmatpush3.bf16.msra.mxu0 %v2911_v60 }
 0x226   : > { %2944 = vmatpush3.bf16.msra.mxu1 %v2943_v16  ;;  %2914 = vmatprep.subr.bf16.mxu0 %v2913_v61 }
 0x227   : > { %2946 = vmatprep.subr.bf16.mxu1 %v2945_v24 }
 0x229   : > { %2916 = vmatpush3.bf16.msra.mxu0 %v2915_v2 }
 0x22a   : > { %2948 = vmatpush3.bf16.msra.mxu1 %v2947_v3 }
 0x277   : > { %v1362_v12 = vpop.f32.mrb[2].mxu0 }
 0x278   : > { %v2953_v13 = vadd.f32 %v1362_v12, %v920_v8  ;;  %v1504_v14 = vpop.f32.mrb[2].mxu1  ;;  %v1364_v15 = vpop.f32.mrb[3].mxu0 }
 0x279   : > { %v2955_v17 = vadd.f32 %v1504_v14, %v928_v9  ;;  %v2954_v18 = vadd.f32 %v1364_v15, %v924_v10  ;;  %v1506_v19 = vpop.f32.mrb[3].mxu1 }
 0x27a   : > { %v1513_v20 = vmax.f32 %v2953_v13, 0.0  ;;  %v2956_v21 = vadd.f32 %v1506_v19, %v932_v11 }
 0x27b   : > { %v1515_v22 = vmax.f32 %v2955_v17, 0.0  ;;  %v1514_v23 = vmax.f32 %v2954_v18, 0.0 }
 0x27c   : > { %v1541_v54 = vrot.slane %v1513_v20, 4  ;;  %v1516_v25 = vmax.f32 %v2956_v21, 0.0 }
 0x27d   : > { %v1553_v26 = vrot.slane %v1515_v22, 4  ;;  %v1547_v27 = vrot.slane %v1514_v23, 4 }
 0x27e   : > { %v1542_v28 = vadd.f32 %v1541_v54, %v1513_v20  ;;  %v1559_v29 = vrot.slane %v1516_v25, 4 }
 0x27f   : > { %v1554_v30 = vadd.f32 %v1553_v26, %v1515_v22  ;;  %v1548_v31 = vadd.f32 %v1547_v27, %v1514_v23 }
 0x280   : > { %v1543_v56 = vrot.slane %v1542_v28, 2  ;;  %v1560_v32 = vadd.f32 %v1559_v29, %v1516_v25 }
 0x281   : > { %v1555_v33 = vrot.slane %v1554_v30, 2  ;;  %v1549_v34 = vrot.slane %v1548_v31, 2 }
 0x282   : > { %v1544_v35 = vadd.f32 %v1543_v56, %v1542_v28  ;;  %v1561_v36 = vrot.slane %v1560_v32, 2 }
 0x283   : > { %v1556_v37 = vadd.f32 %v1555_v33, %v1554_v30  ;;  %v1550_v38 = vadd.f32 %v1549_v34, %v1548_v31 }
 0x284   : > { %v1545_v39 = vrot.slane %v1544_v35, 1  ;;  %v1562_v40 = vadd.f32 %v1561_v36, %v1560_v32 }
 0x285   : > { %v1557_v41 = vrot.slane %v1556_v37, 1  ;;  %v1551_v42 = vrot.slane %v1550_v38, 1 }
 0x286   : > { %v1546_v43 = vadd.f32 %v1545_v39, %v1544_v35  ;;  %v1563_v44 = vrot.slane %v1562_v40, 1 }
 0x287   : > { %v1558_v45 = vadd.f32 %v1557_v41, %v1556_v37  ;;  %v1552_v46 = vadd.f32 %v1551_v42, %v1550_v38 }
 0x288   : > { %v1564_v47 = vadd.f32 %v1563_v44, %v1562_v40  ;;  %v1569_v50 = vmul.f32 0.125, %v1546_v43 }
 0x289   : > { %v1570_v48 = vmul.f32 0.125, %v1552_v46  ;;  %v1571_v51 = vmul.f32 0.125, %v1558_v45 }
 0x28a   : > { %v1572_v49 = vmul.f32 0.125, %v1564_v47 }
 0x28b   : > { %1909 = vmatprep.mubr.f32.mxu0 %v1570_v48 }
 0x28c   : > { %1979 = vmatprep.mubr.f32.mxu1 %v1572_v49  ;;  %1910 = vmatmul.mubr.f32.vlgmr.msra.gmra.mrb[6].mxu0 %v1569_v50 }
 0x28d   : > { %1980 = vmatmul.mubr.f32.vlgmr.msra.gmra.mrb[6].mxu1 %v1571_v51 }
 0x2df   : > { %v2201_v52 = vpop.f32.mrb[4].mxu0 }
 0x2e0   : > { %v2236_v53 = vpop.f32.mrb[4].mxu1  ;;  %v2202_v57 = vpop.f32.mrb[5].mxu0 }
 0x2e1   : > { %v2203_v58 = vadd.f32 %v2202_v57, %v2201_v52  ;;  %v2237_v59 = vpop.f32.mrb[5].mxu1 }
 0x2e2   : > { %v2238_v60 = vadd.f32 %v2237_v59, %v2236_v53 }
 0x2e3   : > { %v1705_v16 = vadd.f32 %v2203_v58, %v1637_v55 }
 0x2e5   : > { %v1775_v61 = vadd.f32 %v2238_v60, %v1705_v16 }
 0x2e7   : > { %1779 = vst.msk [vmem:[%s376_s23] sm:$0x1] %vm1778_vm0, %v1775_v61 }
 0x2e8   : > { %3216 = shalt.err (!%p3213_p0)
}
 0x2e9   : > { %s3217_s24 = scalar_lea.hbm %s4028_s14, 16  ;;  %s3221_s13 = scalar_lea.hbm %s4108_s7, 32 }
 0x2ea   : > { %p3218_p2 = scmp.ne.s32.totalorder %s4028_s14, %s3217_s24  ;;  %p3222_p10 = scmp.lt.u32.totalorder %s4028_s14, %s4108_s7 }
 0x2eb   : > { %p3223_p11 = scmp.lt.u32.totalorder %s3221_s13, %s3217_s24  ;;  %p3225_p6 = scmp.lt.u32.totalorder %s3217_s24, %s4028_s14 }
 0x2ec   : > { %p3219_p8 = pnand %p3218_p2, %p4129_p5 }
 0x2ed   : > { %p3224_p1 = por %p3223_p11, %p3222_p10 }
 0x2ee   : > { %p3220_p4 = pneg %p3219_p8 }
 0x2ef   : > { %p3226_p7 = por %p3225_p6, %p3224_p1 }
 0x2f1   : > { %p3227_p9 = pnand %p3226_p7, %p3220_p4 }
 0x2f3   : > { %3230 = shalt.err (!%p3227_p9)
}
 0x2f4   : > { %2983 = dma.vmem_to_hbm [thread:$0]  (%p4129_p5), %s2004_s10, 16, %s4028_s14, %s1987_s9   ;;  %v1844_v24 = vld [vmem:[#allocation10] sm:$0x1] }
 0x2f5   : > { %s382_s25 = scalar_lea.vmem [#allocation12], %s3582_s1  ;;  %s4056_s17 = scalar_lea.hbm %s4109_s8, %s2164_s18 }
 0x2f6   : > { %s2016_s26 = sshll.u32 %s382_s25, 4  ;;  %s1991_s14 = scalar_lea.sflag [#allocation13], %s3582_s1  ;;  %s4058_s26 = int_to_ptr.vmem [resolvable:$true] %s2016_s26 }
 0x2f7   : > { %s3231_s10 = scalar_lea.vmem %s4058_s26, 16  ;;  %s3319_s9 = smov [#allocation12]  }
 0x2f8   : > { %p3232_p12 = scmp.ne.s32.totalorder %s4058_s26, %s3231_s10  ;;  %s3235_s11 = sshll.u32 %s3319_s9, 4  ;;  %s3236_s11 = int_to_ptr.vmem [resolvable:$false] %s3235_s11 }
 0x2f9   : > { %s3237_s12 = scalar_lea.vmem %s3236_s11, 32  ;;  %p3238_p0 = scmp.lt.s32.totalorder %s4058_s26, %s3236_s11 }
 0x2fa   : > { %p3233_p3 = pnand %p3232_p12, %p4129_p5  ;;  %p3239_p2 = scmp.lt.s32.totalorder %s3237_s12, %s3231_s10 }
 0x2fc   : > { %p3234_p13 = pneg %p3233_p3  ;;  %p3240_p8 = por %p3239_p2, %p3238_p0 }
 0x2fe   : > { %p3241_p4 = pnand %p3240_p8, %p3234_p13 }
 0x35f   : > { %v2271_v62 = vpop.f32.mrb[6].mxu0 }
 0x360   : > { %v2306_v63 = vpop.f32.mrb[6].mxu1  ;;  %v2272_v0 = vpop.f32.mrb[7].mxu0 }
 0x361   : > { %v2273_v1 = vadd.f32 %v2272_v0, %v2271_v62  ;;  %v2307_v2 = vpop.f32.mrb[7].mxu1 }
 0x362   : > { %v2308_v3 = vadd.f32 %v2307_v2, %v2306_v63 }
 0x363   : > { %v1912_v4 = vadd.f32 %v2273_v1, %v1844_v24 }
 0x365   : > { %v1982_v5 = vadd.f32 %v2308_v3, %v1912_v4 }
 0x367   : > { %1985 = vst.msk [vmem:[%s382_s25] sm:$0x1] %vm1778_vm0, %v1982_v5 }
 0x368   : > { %3244 = shalt.err (!%p3241_p4)
}
 0x369   : > { %s3245_s1 = scalar_lea.hbm %s4056_s17, 16  ;;  %s3249_s23 = scalar_lea.hbm %s4109_s8, 32 }
 0x36a   : > { %p3246_p10 = scmp.ne.s32.totalorder %s4056_s17, %s3245_s1  ;;  %p3250_p6 = scmp.lt.u32.totalorder %s4056_s17, %s4109_s8 }
 0x36b   : > { %p3251_p7 = scmp.lt.u32.totalorder %s3249_s23, %s3245_s1  ;;  %p3253_p12 = scmp.lt.u32.totalorder %s3245_s1, %s4056_s17 }
 0x36c   : > { %p3247_p11 = pnand %p3246_p10, %p4129_p5 }
 0x36d   : > { %p3252_p9 = por %p3251_p7, %p3250_p6 }
 0x36e   : > { %p3248_p1 = pneg %p3247_p11 }
 0x36f   : > { %p3254_p3 = por %p3253_p12, %p3252_p9 }
 0x371   : > { %p3255_p13 = pnand %p3254_p3, %p3248_p1 }
 0x373   : > { %3258 = shalt.err (!%p3255_p13)
}
 0x374   : > { %2984 = dma.vmem_to_hbm [thread:$0]  (%p4129_p5), %s4058_s26, 16, %s4056_s17, %s1991_s14  }
 0x375 PF: > { %s2028_s22 = sand.u32 1, %s3297_s27   ;;  %p4130_p0 = scmp.ne.s32.totalorder %s4122_s21, 0 }
 0x376   : > { %p4131_p2 = scmp.ge.s32.totalorder %s3309_s30, 2  ;;  %s2029_s24 = scalar_lea.sflag [#allocation4], %s2028_s22 }
 0x378   : > { %p3005_p8 = pnand %p4131_p2, %p4130_p0 }
 0x37a   : > { %3288 = dma.done.wait (!%p3005_p8), %s2029_s24, 16  }
 0x37b   : > { %3290 = vsyncadd (!%p3005_p8), %s2029_s24, 4294967280  ;;  %s2037_s10 = scalar_lea.sflag [#allocation13], %s2028_s22 }
 0x37c   : > { %3292 = dma.done.wait (!%p3005_p8), %s2037_s10, 16  }
 0x37d   : > { %3294 = vsyncadd (!%p3005_p8), %s2037_s10, 4294967280  ;;  %p27_p5 = scmp.ge.s32.totalorder %s3506_s15, 4   ;;  %s4132_s27 = smov %s3301_s28 }
 0x37e   : > { %s4133_s28 = smov %s3305_s29  ;;  %s4134_s29 = smov %s3517_s16 }
 0x37f   : > { %s4135_s30 = smov %s3506_s15  ;;  %29 = sbr.rel (!%p27_p5) target bundleno = 11 (0xb), region = 126 }
 0x386   :  { %2041 = vsyncpa [#allocation3], 1 }
 0x387   :  { %2043 = vsyncpa [#allocation3 + $0x1], 1 }
 0x388   :  { %2044 = vsyncpa [#allocation6], 1 }
 0x389   :  { %2045 = vsyncpa [#allocation9], 1 }
 0x38a   :  { %2046 = vsyncpa [#allocation4], 1 }
 0x38b   :  { %2048 = vsyncpa [#allocation4 + $0x1], 1 }
 0x38c   :  { %2049 = vsyncpa [#allocation13], 1 }
 0x38d   :  { %2051 = vsyncpa [#allocation13 + $0x1], 1 }

</bundles_post_ra>
